<compile_context>
chip_gen: v7x
topology: tpu7x:2x2x1
jax: 0.10.0
libtpu: 0.0.40
codegen_flags: <defaults>
</compile_context>

<pallas_src>
import functools

import jax
import jax.numpy as jnp
from jax import lax
from jax.experimental import pallas as pl
from jax.experimental.pallas import tpu as pltpu


def _conv_bn_kernel(x_ref, w_ref, b_ref, o_ref, *, K, stride, dilation, th, Wo,
                    cin, cout_pad):
    """One (batch, row-tile) step of conv + folded-BN bias.

    x_ref: (Hp, Wp, Cin)        padded NHWC image (resident across row tiles)
    w_ref: (K*K, Cin, Cout_pad) BN-scaled weights, tap-major
    b_ref: (1, Cout_pad)        folded BN bias (f32)
    o_ref: (th, Wo, Cout_pad)   output row tile (lane-dense channels)
    """
    i = pl.program_id(1)                 # row-tile index within this image
    row0 = i * (th * stride)             # first input row of this output tile
    m = th * Wo
    acc = jnp.zeros((m, cout_pad), dtype=jnp.float32)
    for kh in range(K):
        for kw in range(K):
            r0 = row0 + kh * dilation
            c0 = kw * dilation
            if stride == 1:
                tap = x_ref[pl.ds(r0, th), c0:c0 + Wo, :]
            else:
                tap = x_ref[pl.ds(r0, th, stride=stride),
                            pl.ds(c0, Wo, stride=stride), :]
            acc = acc + jnp.dot(tap.reshape(m, cin), w_ref[kh * K + kw],
                                preferred_element_type=jnp.float32)
    out = acc + b_ref[...]               # folded BN bias (f32 epilogue)
    o_ref[...] = out.reshape(th, Wo, cout_pad).astype(o_ref.dtype)


def basic_conv2d(x, weight, gamma, beta, running_mean, running_var, *,
                 stride=1, padding=0, dilation=1, eps=1e-5,
                 compute_dtype=jnp.bfloat16, target_rows=1024):
    """Equivalent of BasicConv2d.forward (conv2d bias=False + BatchNorm2d, eval stats).

    x:      (N, Cin, H, W)  float32
    weight: (Cout, Cin, K, K)
    gamma/beta/running_mean/running_var: (Cout,)
    returns (N, Cout, Ho, Wo) float32
    """
    N, Cin, H, W = x.shape
    Cout, _, K, _ = weight.shape

    Ho = (H + 2 * padding - dilation * (K - 1) - 1) // stride + 1
    Wo = (W + 2 * padding - dilation * (K - 1) - 1) // stride + 1

    # Output-row tile per grid step (whole image if small).
    th = max(1, min(Ho, max(1, target_rows // max(1, Wo))))
    Ho_pad = -(-Ho // th) * th
    n_row_tiles = Ho_pad // th

    # Lane-dense output channels (multiple of 128).
    Cout_pad = -(-Cout // 128) * 128

    # NCHW -> NHWC, spatial zero-pad (+ extra bottom rows so padded row tiles
    # still read in-bounds), cast to compute dtype (bf16 halves HBM traffic).
    xn = jnp.transpose(x, (0, 2, 3, 1))
    Hp_needed = (Ho_pad - 1) * stride + dilation * (K - 1) + 1
    extra_h = max(0, Hp_needed - (H + 2 * padding))
    xp = jnp.pad(xn, ((0, 0), (padding, padding + extra_h),
                      (padding, padding), (0, 0))).astype(compute_dtype)
    Hp, Wp = xp.shape[1], xp.shape[2]

    # Fold BatchNorm (inference / running stats) into weights and bias.
    # TODO(synk): PyTorch default train-mode BN uses batch statistics; this is
    # the standard fused-inference (eval-mode) form.
    f32 = jnp.float32
    inv_std = lax.rsqrt(running_var.astype(f32) + eps)
    scale = gamma.astype(f32) * inv_std                              # (Cout,)
    bias = beta.astype(f32) - running_mean.astype(f32) * scale       # (Cout,)
    w_scaled = weight.astype(f32) * scale[:, None, None, None]       # (Cout,Cin,K,K)
    w_mat = w_scaled.transpose(2, 3, 1, 0).reshape(K * K, Cin, Cout) # tap-major
    w_mat = jnp.pad(w_mat, ((0, 0), (0, 0), (0, Cout_pad - Cout))).astype(compute_dtype)
    bias_p = jnp.pad(bias, (0, Cout_pad - Cout)).reshape(1, Cout_pad)

    # Explicit VMEM budget (double-buffered blocks), capped for v7x's 64 MiB.
    itemsize = jnp.dtype(compute_dtype).itemsize
    need = (2 * Hp * Wp * Cin * itemsize
            + 2 * K * K * Cin * Cout_pad * itemsize
            + 2 * th * Wo * Cout_pad * 4
            + 2 * Cout_pad * 4 + (4 << 20))
    vmem_limit = int(min(max(need, 32 << 20), 64 << 20))
    # TODO(synk): for very large feature maps (padded image > VMEM budget) this
    # whole-image-resident scheme needs halo'd manual-DMA row tiling instead.

    kernel = functools.partial(
        _conv_bn_kernel, K=K, stride=stride, dilation=dilation,
        th=th, Wo=Wo, cin=Cin, cout_pad=Cout_pad)

    out = pl.pallas_call(
        kernel,
        out_shape=jax.ShapeDtypeStruct((N, Ho_pad, Wo, Cout_pad), jnp.float32),
        grid_spec=pltpu.PrefetchScalarGridSpec(
            num_scalar_prefetch=0,
            grid=(N, n_row_tiles),
            in_specs=[
                # Padded image of batch n, resident across its row tiles.
                pl.BlockSpec((None, Hp, Wp, Cin), lambda n, i: (n, 0, 0, 0)),
                pl.BlockSpec((K * K, Cin, Cout_pad), lambda n, i: (0, 0, 0)),
                pl.BlockSpec((1, Cout_pad), lambda n, i: (0, 0)),
            ],
            out_specs=pl.BlockSpec((None, th, Wo, Cout_pad),
                                   lambda n, i: (n, i, 0, 0)),
        ),
        compiler_params=pltpu.CompilerParams(
            dimension_semantics=("parallel", "parallel"),
            vmem_limit_bytes=vmem_limit),
    )(xp, w_mat, bias_p)

    out = out[:, :Ho, :, :Cout]
    # TODO(synk): in a full network keep NHWC end-to-end and skip this transpose.
    return jnp.transpose(out, (0, 3, 1, 2))


def _reference(x, weight, gamma, beta, running_mean, running_var,
               *, stride, padding, dilation, eps=1e-5):
    y = lax.conv_general_dilated(
        x, weight,
        window_strides=(stride, stride),
        padding=((padding, padding), (padding, padding)),
        rhs_dilation=(dilation, dilation),
        dimension_numbers=("NCHW", "OIHW", "NCHW"),
        precision=lax.Precision.HIGHEST,
    )
    inv_std = 1.0 / jnp.sqrt(running_var + eps)
    s = (gamma * inv_std).reshape(1, -1, 1, 1)
    b = (beta - running_mean * gamma * inv_std).reshape(1, -1, 1, 1)
    return y * s + b


if __name__ == "__main__":
    # BasicConv2d(in_planes=4, out_planes=8, kernel_size=3, padding=1)
    N, Cin, H, W = 2, 4, 16, 16
    Cout, K = 8, 3
    stride, padding, dilation = 1, 1, 1

    key = jax.random.PRNGKey(0)
    k_x, k_w, k_g, k_b, k_m, k_v = jax.random.split(key, 6)
    x = jax.random.normal(k_x, (N, Cin, H, W), dtype=jnp.float32)
    weight = jax.random.normal(k_w, (Cout, Cin, K, K), dtype=jnp.float32) * 0.1
    gamma = jax.random.normal(k_g, (Cout,), dtype=jnp.float32) * 0.1 + 1.0
    beta = jax.random.normal(k_b, (Cout,), dtype=jnp.float32) * 0.1
    running_mean = jax.random.normal(k_m, (Cout,), dtype=jnp.float32) * 0.1
    running_var = jax.nn.softplus(jax.random.normal(k_v, (Cout,), dtype=jnp.float32)) + 0.5

    fn_bf16 = jax.jit(functools.partial(
        basic_conv2d, stride=stride, padding=padding, dilation=dilation))
    fn_f32 = jax.jit(functools.partial(
        basic_conv2d, stride=stride, padding=padding, dilation=dilation,
        compute_dtype=jnp.float32))

    out16 = fn_bf16(x, weight, gamma, beta, running_mean, running_var)
    out32 = fn_f32(x, weight, gamma, beta, running_mean, running_var)
    jax.block_until_ready(out16)
    jax.block_until_ready(out32)

    ref = _reference(x, weight, gamma, beta, running_mean, running_var,
                     stride=stride, padding=padding, dilation=dilation)

    assert out16.shape == (N, Cout, H, W), out16.shape
    assert out32.shape == (N, Cout, H, W), out32.shape
    assert jnp.allclose(out32, ref, atol=2e-3, rtol=2e-3), \
        float(jnp.max(jnp.abs(out32 - ref)))
    assert jnp.allclose(out16, ref, atol=3e-2, rtol=3e-2), \
        float(jnp.max(jnp.abs(out16 - ref)))
    print("KERNEL_OK")
</pallas_src>

<mosaic_0001>
module attributes {stable_mosaic.version = 11 : i64} {
  func.func @_conv_bn_kernel(%arg0: i32, %arg1: i32, %arg2: memref<1x18x18x4xbf16, #tpu.memory_space<vmem>>, %arg3: memref<9x4x128xbf16, #tpu.memory_space<vmem>>, %arg4: memref<1x128xf32, #tpu.memory_space<vmem>>, %arg5: memref<1x16x16x128xf32, #tpu.memory_space<vmem>>) attributes {dimension_semantics = [#tpu.dimension_semantics<parallel>, #tpu.dimension_semantics<parallel>], iteration_bounds = array<i64: 2, 1>, scalar_prefetch = 0 : i64, scratch_operands = 0 : i64, tpu.core_type = #tpu.core_type<tc>, window_params = [{transform_indices = @transform_0, window_bounds = array<i64: 1, 18, 18, 4>}, {pipeline_mode = #tpu.pipeline_mode<synchronous>, transform_indices = @transform_1, window_bounds = array<i64: 9, 4, 128>}, {pipeline_mode = #tpu.pipeline_mode<synchronous>, transform_indices = @transform_2, window_bounds = array<i64: 1, 128>}, {transform_indices = @transform_3, window_bounds = array<i64: 1, 16, 16, 128>}]} {
    %c16_i32 = arith.constant 16 : i32
    %0 = arith.muli %arg1, %c16_i32 : i32
    %cst = arith.constant 0.000000e+00 : f32
    %1 = vector.broadcast %cst : f32 to vector<256x128xf32>
    %c0_i32 = arith.constant 0 : i32
    %2 = arith.addi %0, %c0_i32 : i32
    %c0 = arith.constant 0 : index
    %3 = arith.index_cast %2 : i32 to index
    %c0_0 = arith.constant 0 : index
    %c0_1 = arith.constant 0 : index
    %4 = vector.load %arg2[%c0, %3, %c0_0, %c0_1] : memref<1x18x18x4xbf16, #tpu.memory_space<vmem>>, vector<1x16x16x4xbf16>
    %5 = vector.shape_cast %4 : vector<1x16x16x4xbf16> to vector<16x16x4xbf16>
    %6 = vector.shape_cast %5 : vector<16x16x4xbf16> to vector<256x4xbf16>
    %c0_2 = arith.constant 0 : index
    %c0_3 = arith.constant 0 : index
    %c0_4 = arith.constant 0 : index
    %7 = vector.load %arg3[%c0_2, %c0_3, %c0_4] : memref<9x4x128xbf16, #tpu.memory_space<vmem>>, vector<1x4x128xbf16>
    %8 = vector.shape_cast %7 : vector<1x4x128xbf16> to vector<4x128xbf16>
    %cst_5 = arith.constant dense<0.000000e+00> : vector<256x128xf32>
    %9 = tpu.matmul %6, %8, %cst_5 {dimension_numbers = #tpu.dot_dimension_numbers<[1], [0], [0], [1], [0, 0, 1, 1], [], []>} : vector<256x4xbf16>, vector<4x128xbf16>, vector<256x128xf32> -> vector<256x128xf32>
    %10 = arith.addf %1, %9 : vector<256x128xf32>
    %c0_i32_6 = arith.constant 0 : i32
    %11 = arith.addi %0, %c0_i32_6 : i32
    %c0_7 = arith.constant 0 : index
    %12 = arith.index_cast %11 : i32 to index
    %c1 = arith.constant 1 : index
    %c0_8 = arith.constant 0 : index
    %13 = vector.load %arg2[%c0_7, %12, %c1, %c0_8] : memref<1x18x18x4xbf16, #tpu.memory_space<vmem>>, vector<1x16x16x4xbf16>
    %14 = vector.shape_cast %13 : vector<1x16x16x4xbf16> to vector<16x16x4xbf16>
    %15 = vector.shape_cast %14 : vector<16x16x4xbf16> to vector<256x4xbf16>
    %c1_9 = arith.constant 1 : index
    %c0_10 = arith.constant 0 : index
    %c0_11 = arith.constant 0 : index
    %16 = vector.load %arg3[%c1_9, %c0_10, %c0_11] : memref<9x4x128xbf16, #tpu.memory_space<vmem>>, vector<1x4x128xbf16>
    %17 = vector.shape_cast %16 : vector<1x4x128xbf16> to vector<4x128xbf16>
    %cst_12 = arith.constant dense<0.000000e+00> : vector<256x128xf32>
    %18 = tpu.matmul %15, %17, %cst_12 {dimension_numbers = #tpu.dot_dimension_numbers<[1], [0], [0], [1], [0, 0, 1, 1], [], []>} : vector<256x4xbf16>, vector<4x128xbf16>, vector<256x128xf32> -> vector<256x128xf32>
    %19 = arith.addf %10, %18 : vector<256x128xf32>
    %c0_i32_13 = arith.constant 0 : i32
    %20 = arith.addi %0, %c0_i32_13 : i32
    %c0_14 = arith.constant 0 : index
    %21 = arith.index_cast %20 : i32 to index
    %c2 = arith.constant 2 : index
    %c0_15 = arith.constant 0 : index
    %22 = vector.load %arg2[%c0_14, %21, %c2, %c0_15] : memref<1x18x18x4xbf16, #tpu.memory_space<vmem>>, vector<1x16x16x4xbf16>
    %23 = vector.shape_cast %22 : vector<1x16x16x4xbf16> to vector<16x16x4xbf16>
    %24 = vector.shape_cast %23 : vector<16x16x4xbf16> to vector<256x4xbf16>
    %c2_16 = arith.constant 2 : index
    %c0_17 = arith.constant 0 : index
    %c0_18 = arith.constant 0 : index
    %25 = vector.load %arg3[%c2_16, %c0_17, %c0_18] : memref<9x4x128xbf16, #tpu.memory_space<vmem>>, vector<1x4x128xbf16>
    %26 = vector.shape_cast %25 : vector<1x4x128xbf16> to vector<4x128xbf16>
    %cst_19 = arith.constant dense<0.000000e+00> : vector<256x128xf32>
    %27 = tpu.matmul %24, %26, %cst_19 {dimension_numbers = #tpu.dot_dimension_numbers<[1], [0], [0], [1], [0, 0, 1, 1], [], []>} : vector<256x4xbf16>, vector<4x128xbf16>, vector<256x128xf32> -> vector<256x128xf32>
    %28 = arith.addf %19, %27 : vector<256x128xf32>
    %c1_i32 = arith.constant 1 : i32
    %29 = arith.addi %0, %c1_i32 : i32
    %c0_20 = arith.constant 0 : index
    %30 = arith.index_cast %29 : i32 to index
    %c0_21 = arith.constant 0 : index
    %c0_22 = arith.constant 0 : index
    %31 = vector.load %arg2[%c0_20, %30, %c0_21, %c0_22] : memref<1x18x18x4xbf16, #tpu.memory_space<vmem>>, vector<1x16x16x4xbf16>
    %32 = vector.shape_cast %31 : vector<1x16x16x4xbf16> to vector<16x16x4xbf16>
    %33 = vector.shape_cast %32 : vector<16x16x4xbf16> to vector<256x4xbf16>
    %c3 = arith.constant 3 : index
    %c0_23 = arith.constant 0 : index
    %c0_24 = arith.constant 0 : index
    %34 = vector.load %arg3[%c3, %c0_23, %c0_24] : memref<9x4x128xbf16, #tpu.memory_space<vmem>>, vector<1x4x128xbf16>
    %35 = vector.shape_cast %34 : vector<1x4x128xbf16> to vector<4x128xbf16>
    %cst_25 = arith.constant dense<0.000000e+00> : vector<256x128xf32>
    %36 = tpu.matmul %33, %35, %cst_25 {dimension_numbers = #tpu.dot_dimension_numbers<[1], [0], [0], [1], [0, 0, 1, 1], [], []>} : vector<256x4xbf16>, vector<4x128xbf16>, vector<256x128xf32> -> vector<256x128xf32>
    %37 = arith.addf %28, %36 : vector<256x128xf32>
    %c1_i32_26 = arith.constant 1 : i32
    %38 = arith.addi %0, %c1_i32_26 : i32
    %c0_27 = arith.constant 0 : index
    %39 = arith.index_cast %38 : i32 to index
    %c1_28 = arith.constant 1 : index
    %c0_29 = arith.constant 0 : index
    %40 = vector.load %arg2[%c0_27, %39, %c1_28, %c0_29] : memref<1x18x18x4xbf16, #tpu.memory_space<vmem>>, vector<1x16x16x4xbf16>
    %41 = vector.shape_cast %40 : vector<1x16x16x4xbf16> to vector<16x16x4xbf16>
    %42 = vector.shape_cast %41 : vector<16x16x4xbf16> to vector<256x4xbf16>
    %c4 = arith.constant 4 : index
    %c0_30 = arith.constant 0 : index
    %c0_31 = arith.constant 0 : index
    %43 = vector.load %arg3[%c4, %c0_30, %c0_31] : memref<9x4x128xbf16, #tpu.memory_space<vmem>>, vector<1x4x128xbf16>
    %44 = vector.shape_cast %43 : vector<1x4x128xbf16> to vector<4x128xbf16>
    %cst_32 = arith.constant dense<0.000000e+00> : vector<256x128xf32>
    %45 = tpu.matmul %42, %44, %cst_32 {dimension_numbers = #tpu.dot_dimension_numbers<[1], [0], [0], [1], [0, 0, 1, 1], [], []>} : vector<256x4xbf16>, vector<4x128xbf16>, vector<256x128xf32> -> vector<256x128xf32>
    %46 = arith.addf %37, %45 : vector<256x128xf32>
    %c1_i32_33 = arith.constant 1 : i32
    %47 = arith.addi %0, %c1_i32_33 : i32
    %c0_34 = arith.constant 0 : index
    %48 = arith.index_cast %47 : i32 to index
    %c2_35 = arith.constant 2 : index
    %c0_36 = arith.constant 0 : index
    %49 = vector.load %arg2[%c0_34, %48, %c2_35, %c0_36] : memref<1x18x18x4xbf16, #tpu.memory_space<vmem>>, vector<1x16x16x4xbf16>
    %50 = vector.shape_cast %49 : vector<1x16x16x4xbf16> to vector<16x16x4xbf16>
    %51 = vector.shape_cast %50 : vector<16x16x4xbf16> to vector<256x4xbf16>
    %c5 = arith.constant 5 : index
    %c0_37 = arith.constant 0 : index
    %c0_38 = arith.constant 0 : index
    %52 = vector.load %arg3[%c5, %c0_37, %c0_38] : memref<9x4x128xbf16, #tpu.memory_space<vmem>>, vector<1x4x128xbf16>
    %53 = vector.shape_cast %52 : vector<1x4x128xbf16> to vector<4x128xbf16>
    %cst_39 = arith.constant dense<0.000000e+00> : vector<256x128xf32>
    %54 = tpu.matmul %51, %53, %cst_39 {dimension_numbers = #tpu.dot_dimension_numbers<[1], [0], [0], [1], [0, 0, 1, 1], [], []>} : vector<256x4xbf16>, vector<4x128xbf16>, vector<256x128xf32> -> vector<256x128xf32>
    %55 = arith.addf %46, %54 : vector<256x128xf32>
    %c2_i32 = arith.constant 2 : i32
    %56 = arith.addi %0, %c2_i32 : i32
    %c0_40 = arith.constant 0 : index
    %57 = arith.index_cast %56 : i32 to index
    %c0_41 = arith.constant 0 : index
    %c0_42 = arith.constant 0 : index
    %58 = vector.load %arg2[%c0_40, %57, %c0_41, %c0_42] : memref<1x18x18x4xbf16, #tpu.memory_space<vmem>>, vector<1x16x16x4xbf16>
    %59 = vector.shape_cast %58 : vector<1x16x16x4xbf16> to vector<16x16x4xbf16>
    %60 = vector.shape_cast %59 : vector<16x16x4xbf16> to vector<256x4xbf16>
    %c6 = arith.constant 6 : index
    %c0_43 = arith.constant 0 : index
    %c0_44 = arith.constant 0 : index
    %61 = vector.load %arg3[%c6, %c0_43, %c0_44] : memref<9x4x128xbf16, #tpu.memory_space<vmem>>, vector<1x4x128xbf16>
    %62 = vector.shape_cast %61 : vector<1x4x128xbf16> to vector<4x128xbf16>
    %cst_45 = arith.constant dense<0.000000e+00> : vector<256x128xf32>
    %63 = tpu.matmul %60, %62, %cst_45 {dimension_numbers = #tpu.dot_dimension_numbers<[1], [0], [0], [1], [0, 0, 1, 1], [], []>} : vector<256x4xbf16>, vector<4x128xbf16>, vector<256x128xf32> -> vector<256x128xf32>
    %64 = arith.addf %55, %63 : vector<256x128xf32>
    %c2_i32_46 = arith.constant 2 : i32
    %65 = arith.addi %0, %c2_i32_46 : i32
    %c0_47 = arith.constant 0 : index
    %66 = arith.index_cast %65 : i32 to index
    %c1_48 = arith.constant 1 : index
    %c0_49 = arith.constant 0 : index
    %67 = vector.load %arg2[%c0_47, %66, %c1_48, %c0_49] : memref<1x18x18x4xbf16, #tpu.memory_space<vmem>>, vector<1x16x16x4xbf16>
    %68 = vector.shape_cast %67 : vector<1x16x16x4xbf16> to vector<16x16x4xbf16>
    %69 = vector.shape_cast %68 : vector<16x16x4xbf16> to vector<256x4xbf16>
    %c7 = arith.constant 7 : index
    %c0_50 = arith.constant 0 : index
    %c0_51 = arith.constant 0 : index
    %70 = vector.load %arg3[%c7, %c0_50, %c0_51] : memref<9x4x128xbf16, #tpu.memory_space<vmem>>, vector<1x4x128xbf16>
    %71 = vector.shape_cast %70 : vector<1x4x128xbf16> to vector<4x128xbf16>
    %cst_52 = arith.constant dense<0.000000e+00> : vector<256x128xf32>
    %72 = tpu.matmul %69, %71, %cst_52 {dimension_numbers = #tpu.dot_dimension_numbers<[1], [0], [0], [1], [0, 0, 1, 1], [], []>} : vector<256x4xbf16>, vector<4x128xbf16>, vector<256x128xf32> -> vector<256x128xf32>
    %73 = arith.addf %64, %72 : vector<256x128xf32>
    %c2_i32_53 = arith.constant 2 : i32
    %74 = arith.addi %0, %c2_i32_53 : i32
    %c0_54 = arith.constant 0 : index
    %75 = arith.index_cast %74 : i32 to index
    %c2_55 = arith.constant 2 : index
    %c0_56 = arith.constant 0 : index
    %76 = vector.load %arg2[%c0_54, %75, %c2_55, %c0_56] : memref<1x18x18x4xbf16, #tpu.memory_space<vmem>>, vector<1x16x16x4xbf16>
    %77 = vector.shape_cast %76 : vector<1x16x16x4xbf16> to vector<16x16x4xbf16>
    %78 = vector.shape_cast %77 : vector<16x16x4xbf16> to vector<256x4xbf16>
    %c8 = arith.constant 8 : index
    %c0_57 = arith.constant 0 : index
    %c0_58 = arith.constant 0 : index
    %79 = vector.load %arg3[%c8, %c0_57, %c0_58] : memref<9x4x128xbf16, #tpu.memory_space<vmem>>, vector<1x4x128xbf16>
    %80 = vector.shape_cast %79 : vector<1x4x128xbf16> to vector<4x128xbf16>
    %cst_59 = arith.constant dense<0.000000e+00> : vector<256x128xf32>
    %81 = tpu.matmul %78, %80, %cst_59 {dimension_numbers = #tpu.dot_dimension_numbers<[1], [0], [0], [1], [0, 0, 1, 1], [], []>} : vector<256x4xbf16>, vector<4x128xbf16>, vector<256x128xf32> -> vector<256x128xf32>
    %82 = arith.addf %73, %81 : vector<256x128xf32>
    %c0_60 = arith.constant 0 : index
    %c0_61 = arith.constant 0 : index
    %83 = vector.load %arg4[%c0_60, %c0_61] : memref<1x128xf32, #tpu.memory_space<vmem>>, vector<1x128xf32>
    %84 = vector.broadcast %83 : vector<1x128xf32> to vector<256x128xf32>
    %85 = arith.addf %82, %84 : vector<256x128xf32>
    %86 = vector.shape_cast %85 : vector<256x128xf32> to vector<16x16x128xf32>
    %c0_62 = arith.constant 0 : index
    %c0_63 = arith.constant 0 : index
    %c0_64 = arith.constant 0 : index
    %c0_65 = arith.constant 0 : index
    %87 = vector.load %arg5[%c0_62, %c0_63, %c0_64, %c0_65] : memref<1x16x16x128xf32, #tpu.memory_space<vmem>>, vector<1x16x16x128xf32>
    %88 = vector.shape_cast %87 : vector<1x16x16x128xf32> to vector<16x16x128xf32>
    %89 = vector.shape_cast %86 : vector<16x16x128xf32> to vector<1x16x16x128xf32>
    tpu.vector_store %arg5[%c0_62, %c0_63, %c0_64, %c0_65], %89 {strides = array<i32>} : memref<1x16x16x128xf32, #tpu.memory_space<vmem>>, vector<1x16x16x128xf32>,
    return
  }
  func.func @transform_0(%arg0: i32, %arg1: i32) -> (i32, i32, i32, i32) {
    %c0_i32 = arith.constant 0 : i32
    %c0_i32_0 = arith.constant 0 : i32
    %c0_i32_1 = arith.constant 0 : i32
    %c0_i32_2 = arith.constant 0 : i32
    return %arg0, %c0_i32, %c0_i32_0, %c0_i32_1 : i32, i32, i32, i32
  }
  func.func @transform_1(%arg0: i32, %arg1: i32) -> (i32, i32, i32) {
    %c0_i32 = arith.constant 0 : i32
    %c0_i32_0 = arith.constant 0 : i32
    %c0_i32_1 = arith.constant 0 : i32
    %c0_i32_2 = arith.constant 0 : i32
    return %c0_i32, %c0_i32_0, %c0_i32_1 : i32, i32, i32
  }
  func.func @transform_2(%arg0: i32, %arg1: i32) -> (i32, i32) {
    %c0_i32 = arith.constant 0 : i32
    %c0_i32_0 = arith.constant 0 : i32
    %c0_i32_1 = arith.constant 0 : i32
    return %c0_i32, %c0_i32_0 : i32, i32
  }
  func.func @transform_3(%arg0: i32, %arg1: i32) -> (i32, i32, i32, i32) {
    %c0_i32 = arith.constant 0 : i32
    %c0_i32_0 = arith.constant 0 : i32
    %c0_i32_1 = arith.constant 0 : i32
    return %arg0, %arg1, %c0_i32, %c0_i32_0 : i32, i32, i32, i32
  }
}

</mosaic_0001>

<bundles_post_ra>
// kernel: basic_conv2d.1
= control target key start
LH: loop header
LB: loop body
LE: loop exit
PB: predicated region body
PF: predicated region fallthrough
CT: control target
= control target key end

     0   :  { %s6383_s12 = smov 0   ;;  %s6385_s13 = smov 0   ;;  %s8188_s0 = inlined_call_operand.vmem [shape: bf16[2,18,18,4], index: 0, kind: input, shape index: {}]   ;;  %s8189_s1 = inlined_call_operand.vmem [shape: bf16[9,4,128], index: 1, kind: input, shape index: {}]   ;;  %s8190_s2 = inlined_call_operand.vmem [shape: f32[1,128], index: 2, kind: input, shape index: {}]   ;;  %s8191_s3 = inlined_call_operand.vmem [shape: f32[2,16,16,128], index: 3, kind: output, shape index: {}]  }
   0x1   :  { %s6387_s14 = smov 0  }
   0x2 LB: > { %s25_s15 = sadd.s32 1, %s6357_s13  ;;  %p4938_p0 = scmp.ge.s32.totalorder %s6361_s14, 1  ;;  %s6361_s14 = sphi %s6387_s14, %s13_s14   ;;  %s6357_s13 = sphi %s6385_s13, %s8260_s13   ;;  %s6353_s12 = sphi %s6383_s12, %s8259_s12  }
   0x3   : > { %p27_p1 = scmp.ge.s32.totalorder %s25_s15, 2  ;;  %p151_p2 = scmp.lt.s32.totalorder %s6361_s14, 3 }
   0x5   : > { %s8262_s15 = smov (%p27_p1, %s25_s15), 0  ;;  %p152_p3 = pnand %p4938_p0, %p151_p2 }
   0x7   : > { %155 = sbr.rel (%p152_p3) target bundleno = 586 (0x24a), region = 32 }
   0xe   : > { %v4942_v0 = vld [vmem:[%s8189_s1 + $0x2] sm:$0x3]  ;;  %vm736_vm0 = vcmask 1041408   ;;  %v5169_v1 = vld [vmem:[%s8189_s1 + $0x8] sm:$0x3]  ;;  %p180_p4 = scmp.lt.s32.totalorder %s6353_s12, 1 }
   0xf   : > { %6199 = vmatprep.subr.msk.bf16.mxu1 %vm736_vm0, %v4942_v0  ;;  %6203 = vmatprep.subr.msk.bf16.mxu0 %vm736_vm0, %v5169_v1  ;;  %v738_v2 = vsel %vm736_vm0, %v4942_v0, 0  ;;  %v6411_v3 = vsel %vm736_vm0, %v5169_v1, 0  ;;  %v233_v4 = vld [vmem:[%s8189_s1] sm:$0x3]  ;;  %v5234_v5 = vld [vmem:[%s8189_s1 + $0xa] sm:$0x3] }
  0x10   : > { %8205 = vst [vmem:[#allocation2_spill] sm:$0xff] %v6411_v3  ;;  %5636 = vmatpush3.bf16.msra.mxu1 %v738_v2  ;;  %5772 = vmatpush3.bf16.msra.mxu0 %v6411_v3  ;;  %s8264_s12 = smov (!%p180_p4, %s6353_s12), 1  ;;  %vm250_vm1 = vsmask.f32 3328  ;;  %vm251_vm2 = vsmask.f32 7440 }
  0x11   : > { %6200 = vmatprep.subr.msk.bf16.mxu1 %vm736_vm0, %v233_v4  ;;  %6205 = vmatprep.subr.msk.bf16.mxu0 %vm736_vm0, %v5234_v5  ;;  %s6209_s24 = smul.u32 216, %s8264_s12  ;;  %vm687_vm3 = vcmask 31744   ;;  %v6441_v17 = vsel %vm736_vm0, %v233_v4, 0  ;;  %v6447_v26 = vld [vmem:[%s8189_s1 + $0xc] sm:$0x3]  ;;  %vm6454_vm4 = vmor %vm250_vm1, %vm251_vm2  ;;  %v6460_v37 = vsel %vm736_vm0, %v5234_v5, 0 }
  0x12   : > { %v6464_v41 = vsel %vm736_vm0, %v6447_v26, 0  ;;  %vm1241_vm5 = vcmask 1042432   ;;  %vm1242_vm6 = vcmask 1046532   ;;  %s5481_s19 = sshll.u32 %s8264_s12, 8 }
  0x13   : > { %s6428_s27 = scalar_lea.vmem %s8188_s0, %s6209_s24  ;;  %vm6680_vm7 = vmor %vm1241_vm5, %vm1242_vm6  ;;  %s8113_s24 = scalar_lea.vmem %s8191_s3, %s5481_s19 }
  0x14   : > { %v201_v6 = vld [vmem:[%s6428_s27] sm:$0xf]  ;;  %v202_v7 = vld [vmem:[%s6428_s27 + $0x4] sm:$0xf]  ;;  %v234_v8 = vld [vmem:[%s6428_s27 + $0x8] sm:$0x1] }
  0x15   : > { %v254_v9 = vshrl.u32 %v201_v6, 16  ;;  %v257_v10 = vshll.u32 %v201_v6, 16  ;;  %v263_v11 = vshll.u32 %v202_v7, 16  ;;  %v267_v12 = vshrl.u32 %v202_v7, 16  ;;  %v5121_v13 = vld [vmem:[%s6428_s27 + $0xc] sm:$0xf] }
  0x16   : > { %v273_v14 = vshll.u32 %v234_v8, 16  ;;  %v6435_v15 = vld [vmem:[%s6428_s27 + $0x10] sm:$0xf]  ;;  %v6438_v16 = vld [vmem:[%s6428_s27 + $0x14] sm:$0x1]  ;;  %v2061_v23 = vshrl.u32 %v5121_v13, 16 }
  0x17   : > { %v256_v18 = vrot.slane %v254_v9, 4  ;;  %v259_v19 = vrot.slane %v257_v10, 5  ;;  %v265_v20 = vrot.slane %v263_v11, 5  ;;  %v269_v21 = vrot.slane %v267_v12, 4  ;;  %v203_v31 = vld [vmem:[%s6428_s27 + $0xc] sm:$0xf] }
  0x18   : > { %v275_v22 = vrot.slane %v273_v14, 5  ;;  %v2064_v24 = vshll.u32 %v5121_v13, 16  ;;  %v2070_v25 = vshll.u32 %v6435_v15, 16  ;;  %v2074_v29 = vshrl.u32 %v6435_v15, 16  ;;  %v204_v36 = vld [vmem:[%s6428_s27 + $0x10] sm:$0xf] }
  0x19   : > { %v260_v27 = vor.u32 %v259_v19, %v256_v18  ;;  %v270_v28 = vor.u32 %v269_v21, %v265_v20  ;;  %v2080_v30 = vshll.u32 %v6438_v16, 16  ;;  %v2063_v33 = vrot.slane %v2061_v23, 4  ;;  %v235_v44 = vld [vmem:[%s6428_s27 + $0x14] sm:$0x1]  ;;  %v5124_v55 = vld [vmem:[%s6428_s27 + $0x18] sm:$0xf] }
  0x1a   : > { %v2066_v34 = vrot.slane %v2064_v24, 5  ;;  %v2072_v35 = vrot.slane %v2070_v25, 5  ;;  %v2076_v40 = vrot.slane %v2074_v29, 4  ;;  %v278_v45 = vshrl.u32 %v203_v31, 16  ;;  %v6473_v60 = vld [vmem:[%s6428_s27 + $0x1c] sm:$0xf] }
  0x1b   : > { %v261_v38 = vrot.slane %v260_v27, 4  ;;  %v271_v39 = vrot.slane %v270_v28, 4  ;;  %v2082_v43 = vrot.slane %v2080_v30, 5  ;;  %v281_v46 = vshll.u32 %v203_v31, 16  ;;  %v6481_v1 = vld [vmem:[%s6428_s27 + $0x20] sm:$0x1] }
  0x1c   : > { %v2067_v42 = vor.u32 %v2066_v34, %v2063_v33  ;;  %v2077_v49 = vor.u32 %v2076_v40, %v2072_v35  ;;  %v287_v50 = vshll.u32 %v204_v36, 16  ;;  %v280_v53 = vrot.slane %v278_v45, 4  ;;  %v205_v18 = vld [vmem:[%s6428_s27 + $0x18] sm:$0xf]  ;;  %v206_v23 = vld [vmem:[%s6428_s27 + $0x1c] sm:$0xf] }
  0x1d   : > { %v266_v47 = vsel %vm6454_vm4, %v261_v38, %v265_v20  ;;  %v276_v48 = vsel %vm6454_vm4, %v271_v39, %v275_v22  ;;  %v283_v54 = vrot.slane %v281_v46, 5  ;;  %v291_v58 = vshrl.u32 %v204_v36, 16  ;;  %v236_v31 = vld [vmem:[%s6428_s27 + $0x20] sm:$0x1]  ;;  %v5127_v40 = vld [vmem:[%s6428_s27 + $0x24] sm:$0xf] }
  0x1e   : > { %v4943_v51 = vcombine.low %v266_v47, %v276_v48  ;;  %v2068_v52 = vrot.slane %v2067_v42, 4  ;;  %v2078_v56 = vrot.slane %v2077_v49, 4  ;;  %v289_v57 = vrot.slane %v287_v50, 5  ;;  %v6504_v46 = vld [vmem:[%s6428_s27 + $0x28] sm:$0xf] }
  0x1f   : > { %v297_v59 = vshll.u32 %v235_v44, 16  ;;  %v2804_v62 = vrot.slane %v6435_v15, 5  ;;  %v2807_v63 = vrot.slane %v6438_v16, 5  ;;  %v284_v0 = vor.u32 %v283_v54, %v280_v53  ;;  %v6513_v54 = vld [vmem:[%s6428_s27 + $0x2c] sm:$0x1] }
  0x20   : > { %5637 = vmatprep.mubr.msk.bf16.mxu1 %vm687_vm3, %v4943_v51  ;;  %v2073_v61 = vsel %vm6454_vm4, %v2068_v52, %v2072_v35  ;;  %v2083_v2 = vsel %vm6454_vm4, %v2078_v56, %v2082_v43  ;;  %v293_v4 = vrot.slane %v291_v58, 4  ;;  %v2085_v6 = vshrl.u32 %v5124_v55, 16  ;;  %v5023_v51 = vld [vmem:[%s8189_s1 + $0x4] sm:$0x3]  ;;  %v6713_v16 = vld [vmem:[%s6428_s27 + $0x7c] sm:$0xf] }
  0x21   : > { %v299_v5 = vrot.slane %v297_v59, 5  ;;  %v5170_v7 = vcombine.low %v2073_v61, %v2083_v2  ;;  %v285_v8 = vrot.slane %v284_v0, 4  ;;  %v2088_v9 = vshll.u32 %v5124_v55, 16  ;;  %v207_v0 = vld [vmem:[%s6428_s27 + $0x24] sm:$0xf] }
  0x22   : > { %v2094_v10 = vshll.u32 %v6473_v60, 16  ;;  %v294_v11 = vor.u32 %v293_v4, %v289_v57  ;;  %v2087_v12 = vrot.slane %v2085_v6, 4  ;;  %v2098_v13 = vshrl.u32 %v6473_v60, 16 }
  0x23   : > { %v2104_v14 = vshll.u32 %v6481_v1, 16  ;;  %5773 = vmatprep.mubr.msk.bf16.mxu0 %vm687_vm3, %v5170_v7  ;;  %v290_v19 = vsel %vm6454_vm4, %v285_v8, %v289_v57  ;;  %v2090_v20 = vrot.slane %v2088_v9, 5  ;;  %v2811_v22 = vrot.slane %v6473_v60, 5  ;;  %v208_v7 = vld [vmem:[%s6428_s27 + $0x28] sm:$0xf] }
  0x24   : > { %v2096_v21 = vrot.slane %v2094_v10, 5  ;;  %v295_v24 = vrot.slane %v294_v11, 4  ;;  %v2100_v25 = vrot.slane %v2098_v13, 4  ;;  %v2814_v28 = vrot.slane %v6481_v1, 5  ;;  %v237_v13 = vld [vmem:[%s6428_s27 + $0x2c] sm:$0x1] }
  0x25   : > { %v2106_v27 = vrot.slane %v2104_v14, 5  ;;  %v2091_v29 = vor.u32 %v2090_v20, %v2087_v12  ;;  %v6497_v30 = vrot.slane %v2811_v22, 4  ;;  %v302_v33 = vshrl.u32 %v205_v18, 16 }
  0x26   : > { %v305_v34 = vshll.u32 %v205_v18, 16  ;;  %v300_v35 = vsel %vm6454_vm4, %v295_v24, %v299_v5  ;;  %v2101_v36 = vor.u32 %v2100_v25, %v2096_v21  ;;  %v311_v38 = vshll.u32 %v206_v23, 16  ;;  %v5130_v24 = vld [vmem:[%s6428_s27 + $0x30] sm:$0xf] }
  0x27   : > { %v315_v39 = vshrl.u32 %v206_v23, 16  ;;  %v4944_v42 = vcombine.low %v290_v19, %v300_v35  ;;  %v2092_v43 = vrot.slane %v2091_v29, 4  ;;  %v304_v44 = vrot.slane %v302_v33, 4  ;;  %v6533_v33 = vld [vmem:[%s6428_s27 + $0x34] sm:$0xf] }
  0x28   : > { %v307_v45 = vrot.slane %v305_v34, 5  ;;  %v2102_v47 = vrot.slane %v2101_v36, 4  ;;  %v313_v48 = vrot.slane %v311_v38, 5  ;;  %v321_v50 = vshll.u32 %v236_v31, 16 }
  0x29   : > { %v317_v49 = vrot.slane %v315_v39, 4  ;;  %5638 = vmatmul.mubr.msk.bf16.vlgmr.msra.gmra.mrb[0].mxu1 %vm687_vm3, %v4944_v42  ;;  %v2097_v52 = vsel %vm6454_vm4, %v2092_v43, %v2096_v21  ;;  %v2109_v55 = vshrl.u32 %v5127_v40, 16  ;;  %v2112_v56 = vshll.u32 %v5127_v40, 16  ;;  %v6541_v40 = vld [vmem:[%s6428_s27 + $0x38] sm:$0x1] }
  0x2a   : > { %v308_v53 = vor.u32 %v307_v45, %v304_v44  ;;  %5670 = vmatpush3.bf16.msra.mxu1 %v6441_v17  ;;  %v2107_v57 = vsel %vm6454_vm4, %v2102_v47, %v2106_v27  ;;  %v323_v59 = vrot.slane %v321_v50, 5  ;;  %v2118_v61 = vshll.u32 %v6504_v46, 16 }
  0x2b   : > { %v318_v58 = vor.u32 %v317_v49, %v313_v48  ;;  %v5171_v2 = vcombine.low %v2097_v52, %v2107_v57  ;;  %v2111_v5 = vrot.slane %v2109_v55, 4  ;;  %v2114_v6 = vrot.slane %v2112_v56, 5  ;;  %6201 = vmatprep.subr.msk.bf16.mxu1 %vm736_vm0, %v5023_v51  ;;  %v209_v52 = vld [vmem:[%s6428_s27 + $0x30] sm:$0xf] }
  0x2c   : > { %v309_v4 = vrot.slane %v308_v53, 4  ;;  %v2120_v9 = vrot.slane %v2118_v61, 5  ;;  %v2122_v17 = vshrl.u32 %v6504_v46, 16  ;;  %v2128_v10 = vshll.u32 %v6513_v54, 16 }
  0x2d   : > { %v319_v8 = vrot.slane %v318_v58, 4  ;;  %5774 = vmatmul.mubr.msk.bf16.vlgmr.msra.gmra.mrb[0].mxu0 %vm687_vm3, %v5171_v2  ;;  %v2115_v12 = vor.u32 %v2114_v6, %v2111_v5  ;;  %v326_v14 = vshrl.u32 %v207_v0, 16  ;;  %v329_v18 = vshll.u32 %v207_v0, 16  ;;  %v210_v58 = vld [vmem:[%s6428_s27 + $0x34] sm:$0xf] }
  0x2e   : > { %v314_v11 = vsel %vm6454_vm4, %v309_v4, %v313_v48  ;;  %5806 = vmatpush3.bf16.msra.mxu0 %v6460_v37  ;;  %v2124_v20 = vrot.slane %v2122_v17, 4  ;;  %v2130_v21 = vrot.slane %v2128_v10, 5  ;;  %v335_v23 = vshll.u32 %v208_v7, 16  ;;  %v238_v4 = vld [vmem:[%s6428_s27 + $0x38] sm:$0x1] }
  0x2f   : > { %v324_v19 = vsel %vm6454_vm4, %v319_v8, %v323_v59  ;;  %v2116_v27 = vrot.slane %v2115_v12, 4  ;;  %v328_v29 = vrot.slane %v326_v14, 4  ;;  %v331_v31 = vrot.slane %v329_v18, 5  ;;  %6206 = vmatprep.subr.msk.bf16.mxu0 %vm736_vm0, %v6447_v26  ;;  %v5133_v12 = vld [vmem:[%s6428_s27 + $0x3c] sm:$0xf] }
  0x30   : > { %v4945_v25 = vcombine.low %v314_v11, %v324_v19  ;;  %v2125_v34 = vor.u32 %v2124_v20, %v2120_v9  ;;  %v337_v35 = vrot.slane %v335_v23, 5  ;;  %v339_v37 = vshrl.u32 %v208_v7, 16  ;;  %v6558_v20 = vld [vmem:[%s6428_s27 + $0x40] sm:$0xf] }
  0x31   : > { %v345_v36 = vshll.u32 %v237_v13, 16  ;;  %v2121_v38 = vsel %vm6454_vm4, %v2116_v27, %v2120_v9  ;;  %v332_v39 = vor.u32 %v331_v31, %v328_v29  ;;  %v2133_v42 = vshrl.u32 %v5130_v24, 16 }
  0x32   : > { %5641 = vmatprep.mubr.msk.bf16.mxu1 %vm687_vm3, %v4945_v25  ;;  %v2136_v43 = vshll.u32 %v5130_v24, 16  ;;  %v2126_v44 = vrot.slane %v2125_v34, 4  ;;  %v341_v45 = vrot.slane %v339_v37, 4  ;;  %v2142_v26 = vshll.u32 %v6533_v33, 16  ;;  %v6563_v34 = vld [vmem:[%s6428_s27 + $0x44] sm:$0x1] }
  0x33   : > { %v347_v47 = vrot.slane %v345_v36, 5  ;;  %v333_v48 = vrot.slane %v332_v39, 4  ;;  %v2135_v49 = vrot.slane %v2133_v42, 4  ;;  %v2146_v51 = vshrl.u32 %v6533_v33, 16  ;;  %v211_v42 = vld [vmem:[%s6428_s27 + $0x3c] sm:$0xf] }
  0x34   : > { %v2138_v50 = vrot.slane %v2136_v43, 5  ;;  %v2131_v53 = vsel %vm6454_vm4, %v2126_v44, %v2130_v21  ;;  %v342_v55 = vor.u32 %v341_v45, %v337_v35  ;;  %v2144_v56 = vrot.slane %v2142_v26, 5  ;;  %v212_v26 = vld [vmem:[%s6428_s27 + $0x40] sm:$0xf] }
  0x35   : > { %v2152_v57 = vshll.u32 %v6541_v40, 16  ;;  %v5172_v59 = vcombine.low %v2121_v38, %v2131_v53  ;;  %v338_v61 = vsel %vm6454_vm4, %v333_v48, %v337_v35  ;;  %v2148_v2 = vrot.slane %v2146_v51, 4 }
  0x36   : > { %v2139_v0 = vor.u32 %v2138_v50, %v2135_v49  ;;  %v343_v5 = vrot.slane %v342_v55, 4  ;;  %v350_v7 = vshrl.u32 %v209_v52, 16  ;;  %v353_v8 = vshll.u32 %v209_v52, 16 }
  0x37   : > { %v2154_v6 = vrot.slane %v2152_v57, 5  ;;  %5777 = vmatprep.mubr.msk.bf16.mxu0 %vm687_vm3, %v5172_v59  ;;  %v2149_v17 = vor.u32 %v2148_v2, %v2144_v56  ;;  %v359_v10 = vshll.u32 %v210_v58, 16  ;;  %v363_v11 = vshrl.u32 %v210_v58, 16  ;;  %v5136_v2 = vld [vmem:[%s6428_s27 + $0x48] sm:$0xf] }
  0x38   : > { %v2140_v9 = vrot.slane %v2139_v0, 4  ;;  %v348_v13 = vsel %vm6454_vm4, %v343_v5, %v347_v47  ;;  %v352_v14 = vrot.slane %v350_v7, 4  ;;  %v355_v18 = vrot.slane %v353_v8, 5  ;;  %v6581_v8 = vld [vmem:[%s6428_s27 + $0x4c] sm:$0xf] }
  0x39   : > { %v369_v19 = vshll.u32 %v238_v4, 16  ;;  %v4946_v21 = vcombine.low %v338_v61, %v348_v13  ;;  %v2150_v24 = vrot.slane %v2149_v17, 4  ;;  %v361_v25 = vrot.slane %v359_v10, 5  ;;  %v239_v61 = vld [vmem:[%s6428_s27 + $0x44] sm:$0x1] }
  0x3a   : > { %v2145_v23 = vsel %vm6454_vm4, %v2140_v9, %v2144_v56  ;;  %v356_v27 = vor.u32 %v355_v18, %v352_v14  ;;  %v365_v29 = vrot.slane %v363_v11, 4  ;;  %v2157_v35 = vshrl.u32 %v5133_v12, 16 }
  0x3b   : > { %v371_v31 = vrot.slane %v369_v19, 5  ;;  %5642 = vmatmul.mubr.msk.bf16.gmra.mrb[4].mxu1 %vm687_vm3, %v4946_v21  ;;  %v2155_v37 = vsel %vm6454_vm4, %v2150_v24, %v2154_v6  ;;  %v2160_v36 = vshll.u32 %v5133_v12, 16  ;;  %v2166_v38 = vshll.u32 %v6558_v20, 16 }
  0x3c   : > { %v2170_v39 = vshrl.u32 %v6558_v20, 16  ;;  %v5173_v43 = vcombine.low %v2145_v23, %v2155_v37  ;;  %v357_v44 = vrot.slane %v356_v27, 4  ;;  %v366_v45 = vor.u32 %v365_v29, %v361_v25  ;;  %v6589_v23 = vld [vmem:[%s6428_s27 + $0x50] sm:$0x1]  ;;  %v6593_v27 = vld [vmem:[%s6428_s27 + $0x48] sm:$0xf] }
  0x3d   : > { %v2159_v47 = vrot.slane %v2157_v35, 4  ;;  %v2162_v48 = vrot.slane %v2160_v36, 5  ;;  %v2168_v49 = vrot.slane %v2166_v38, 5  ;;  %v2176_v51 = vshll.u32 %v6563_v34, 16  ;;  %v6596_v36 = vld [vmem:[%s6428_s27 + $0x4c] sm:$0xf] }
  0x3e   : > { %v2172_v50 = vrot.slane %v2170_v39, 4  ;;  %5778 = vmatmul.mubr.msk.bf16.gmra.mrb[4].mxu0 %vm687_vm3, %v5173_v43  ;;  %v362_v52 = vsel %vm6454_vm4, %v357_v44, %v361_v25  ;;  %v367_v53 = vrot.slane %v366_v45, 4  ;;  %v374_v55 = vshrl.u32 %v211_v42, 16 }
  0x3f   : > { %v377_v56 = vshll.u32 %v211_v42, 16  ;;  %v2163_v57 = vor.u32 %v2162_v48, %v2159_v47  ;;  %v2178_v59 = vrot.slane %v2176_v51, 5  ;;  %v383_v0 = vshll.u32 %v212_v26, 16 }
  0x40   : > { %v2173_v58 = vor.u32 %v2172_v50, %v2168_v49  ;;  %v372_v4 = vsel %vm6454_vm4, %v367_v53, %v371_v31  ;;  %v376_v5 = vrot.slane %v374_v55, 4  ;;  %v387_v7 = vshrl.u32 %v212_v26, 16  ;;  %v240_v26 = vld [vmem:[%s6428_s27 + $0x50] sm:$0x1]  ;;  %v5139_v53 = vld [vmem:[%s6428_s27 + $0x54] sm:$0xf] }
  0x41   : > { %v379_v6 = vrot.slane %v377_v56, 5  ;;  %v4947_v9 = vcombine.low %v362_v52, %v372_v4  ;;  %v2164_v17 = vrot.slane %v2163_v57, 4  ;;  %v385_v11 = vrot.slane %v383_v0, 5  ;;  %v6612_v4 = vld [vmem:[%s6428_s27 + $0x58] sm:$0xf] }
  0x42   : > { %v2174_v10 = vrot.slane %v2173_v58, 4  ;;  %v389_v13 = vrot.slane %v387_v7, 4  ;;  %v393_v14 = vshll.u32 %v239_v61, 16  ;;  %v2181_v18 = vshrl.u32 %v5136_v2, 16 }
  0x43   : > { %v380_v12 = vor.u32 %v379_v6, %v376_v5  ;;  %5645 = vmatprep.mubr.msk.bf16.mxu1 %vm687_vm3, %v4947_v9  ;;  %v2169_v19 = vsel %vm6454_vm4, %v2164_v17, %v2168_v49  ;;  %v2184_v24 = vshll.u32 %v5136_v2, 16  ;;  %v2190_v25 = vshll.u32 %v6581_v8, 16 }
  0x44   : > { %v2179_v21 = vsel %vm6454_vm4, %v2174_v10, %v2178_v59  ;;  %v390_v35 = vor.u32 %v389_v13, %v385_v11  ;;  %v395_v37 = vrot.slane %v393_v14, 5  ;;  %v2183_v38 = vrot.slane %v2181_v18, 4 }
  0x45   : > { %v5174_v29 = vcombine.low %v2169_v19, %v2179_v21  ;;  %v381_v31 = vrot.slane %v380_v12, 4  ;;  %v2186_v39 = vrot.slane %v2184_v24, 5  ;;  %v2192_v42 = vrot.slane %v2190_v25, 5  ;;  %v6618_v12 = vld [vmem:[%s6428_s27 + $0x5c] sm:$0x1] }
  0x46   : > { %v2194_v43 = vshrl.u32 %v6581_v8, 16  ;;  %v391_v45 = vrot.slane %v390_v35, 4  ;;  %v2200_v47 = vshll.u32 %v6589_v23, 16  ;;  %v398_v48 = vshrl.u32 %v6593_v27, 16  ;;  %v6622_v24 = vld [vmem:[%s6428_s27 + $0x54] sm:$0xf] }
  0x47   : > { %5781 = vmatprep.mubr.msk.bf16.mxu0 %vm687_vm3, %v5174_v29  ;;  %v386_v44 = vsel %vm6454_vm4, %v381_v31, %v385_v11  ;;  %v2187_v49 = vor.u32 %v2186_v39, %v2183_v38  ;;  %v401_v51 = vshll.u32 %v6593_v27, 16  ;;  %v407_v52 = vshll.u32 %v6596_v36, 16 }
  0x48   : > { %v2196_v50 = vrot.slane %v2194_v43, 4  ;;  %v396_v55 = vsel %vm6454_vm4, %v391_v45, %v395_v37  ;;  %v2202_v56 = vrot.slane %v2200_v47, 5  ;;  %v400_v57 = vrot.slane %v398_v48, 4  ;;  %v6628_v37 = vld [vmem:[%s6428_s27 + $0x58] sm:$0xf] }
  0x49   : > { %v411_v58 = vshrl.u32 %v6596_v36, 16  ;;  %v4948_v59 = vcombine.low %v386_v44, %v396_v55  ;;  %v2188_v61 = vrot.slane %v2187_v49, 4  ;;  %v403_v2 = vrot.slane %v401_v51, 5 }
  0x4a   : > { %v2197_v0 = vor.u32 %v2196_v50, %v2192_v42  ;;  %v409_v5 = vrot.slane %v407_v52, 5  ;;  %v417_v7 = vshll.u32 %v240_v26, 16  ;;  %v2205_v9 = vshrl.u32 %v5139_v53, 16  ;;  %v241_v26 = vld [vmem:[%s6428_s27 + $0x5c] sm:$0x1] }
  0x4b   : > { %v413_v6 = vrot.slane %v411_v58, 4  ;;  %5646 = vmatmul.mubr.msk.bf16.gmra.mrb[8].mxu1 %vm687_vm3, %v4948_v59  ;;  %v2193_v17 = vsel %vm6454_vm4, %v2188_v61, %v2192_v42  ;;  %v404_v11 = vor.u32 %v403_v2, %v400_v57  ;;  %v2208_v13 = vshll.u32 %v5139_v53, 16  ;;  %v5142_v53 = vld [vmem:[%s6428_s27 + $0x60] sm:$0xf]  ;;  %v6642_v59 = vld [vmem:[%s6428_s27 + $0x64] sm:$0xf] }
  0x4c   : > { %v2198_v10 = vrot.slane %v2197_v0, 4  ;;  %v419_v18 = vrot.slane %v417_v7, 5  ;;  %v2207_v19 = vrot.slane %v2205_v9, 4  ;;  %v2214_v21 = vshll.u32 %v6612_v4, 16  ;;  %v6649_v9 = vld [vmem:[%s6428_s27 + $0x68] sm:$0x1] }
  0x4d   : > { %v414_v14 = vor.u32 %v413_v6, %v409_v5  ;;  %v405_v29 = vrot.slane %v404_v11, 4  ;;  %v2210_v31 = vrot.slane %v2208_v13, 5  ;;  %v2218_v35 = vshrl.u32 %v6612_v4, 16 }
  0x4e   : > { %v2203_v25 = vsel %vm6454_vm4, %v2198_v10, %v2202_v56  ;;  %v2216_v42 = vrot.slane %v2214_v21, 5  ;;  %v2224_v43 = vshll.u32 %v6618_v12, 16  ;;  %v422_v48 = vshrl.u32 %v6622_v24, 16 }
  0x4f   : > { %v5175_v38 = vcombine.low %v2193_v17, %v2203_v25  ;;  %v415_v39 = vrot.slane %v414_v14, 4  ;;  %v410_v44 = vsel %vm6454_vm4, %v405_v29, %v409_v5  ;;  %v2211_v45 = vor.u32 %v2210_v31, %v2207_v19  ;;  %v6653_v19 = vld [vmem:[%s6428_s27 + $0x60] sm:$0xf] }
  0x50   : > { %v2220_v47 = vrot.slane %v2218_v35, 4  ;;  %v2226_v50 = vrot.slane %v2224_v43, 5  ;;  %v425_v51 = vshll.u32 %v6622_v24, 16  ;;  %v431_v52 = vshll.u32 %v6628_v37, 16  ;;  %v6659_v35 = vld [vmem:[%s6428_s27 + $0x64] sm:$0xf] }
  0x51   : > { %5782 = vmatmul.mubr.msk.bf16.gmra.mrb[8].mxu0 %vm687_vm3, %v5175_v38  ;;  %v420_v49 = vsel %vm6454_vm4, %v415_v39, %v419_v18  ;;  %v2212_v56 = vrot.slane %v2211_v45, 4  ;;  %v424_v58 = vrot.slane %v422_v48, 4  ;;  %v435_v2 = vshrl.u32 %v6628_v37, 16 }
  0x52   : > { %v4949_v55 = vcombine.low %v410_v44, %v420_v49  ;;  %v2221_v57 = vor.u32 %v2220_v47, %v2216_v42  ;;  %v427_v61 = vrot.slane %v425_v51, 5  ;;  %v433_v0 = vrot.slane %v431_v52, 5 }
  0x53   : > { %v441_v5 = vshll.u32 %v241_v26, 16  ;;  %v2217_v6 = vsel %vm6454_vm4, %v2212_v56, %v2216_v42  ;;  %v2229_v17 = vshrl.u32 %v5142_v53, 16  ;;  %v2232_v10 = vshll.u32 %v5142_v53, 16 }
  0x54   : > { %5649 = vmatprep.mubr.msk.bf16.mxu1 %vm687_vm3, %v4949_v55  ;;  %v2222_v7 = vrot.slane %v2221_v57, 4  ;;  %v428_v11 = vor.u32 %v427_v61, %v424_v58  ;;  %v437_v13 = vrot.slane %v435_v2, 4  ;;  %v2238_v18 = vshll.u32 %v6642_v59, 16  ;;  %v5202_v58 = vld [vmem:[%s6428_s27 + $0xc] sm:$0xe] }
  0x55   : > { %v443_v14 = vrot.slane %v441_v5, 5  ;;  %v2231_v25 = vrot.slane %v2229_v17, 4  ;;  %v2234_v29 = vrot.slane %v2232_v10, 5  ;;  %v2242_v31 = vshrl.u32 %v6642_v59, 16 }
  0x56   : > { %v2227_v21 = vsel %vm6454_vm4, %v2222_v7, %v2226_v50  ;;  %v429_v39 = vrot.slane %v428_v11, 4  ;;  %v438_v42 = vor.u32 %v437_v13, %v433_v0  ;;  %v2240_v43 = vrot.slane %v2238_v18, 5  ;;  %v242_v50 = vld [vmem:[%s6428_s27 + $0x68] sm:$0x1] }
  0x57   : > { %v5176_v38 = vcombine.low %v2217_v6, %v2227_v21  ;;  %v2235_v44 = vor.u32 %v2234_v29, %v2231_v25  ;;  %v2244_v45 = vrot.slane %v2242_v31, 4  ;;  %v2248_v47 = vshll.u32 %v6649_v9, 16  ;;  %v6687_v29 = vld [vmem:[%s6428_s27 + $0x70] sm:$0xf] }
  0x58   : > { %v446_v26 = vshrl.u32 %v6653_v19, 16  ;;  %v434_v48 = vsel %vm6454_vm4, %v429_v39, %v433_v0  ;;  %v439_v49 = vrot.slane %v438_v42, 4  ;;  %v449_v51 = vshll.u32 %v6653_v19, 16  ;;  %v6674_v0 = vld [vmem:[%s6428_s27 + $0x6c] sm:$0xf] }
  0x59   : > { %5785 = vmatprep.mubr.msk.bf16.mxu0 %vm687_vm3, %v5176_v38  ;;  %v455_v52 = vshll.u32 %v6659_v35, 16  ;;  %v2236_v53 = vrot.slane %v2235_v44, 4  ;;  %v2245_v55 = vor.u32 %v2244_v45, %v2240_v43  ;;  %v2250_v56 = vrot.slane %v2248_v47, 5 }
  0x5a   : > { %v448_v57 = vrot.slane %v446_v26, 4  ;;  %v444_v61 = vsel %vm6454_vm4, %v439_v49, %v443_v14  ;;  %v451_v2 = vrot.slane %v449_v51, 5  ;;  %v459_v6 = vshrl.u32 %v6659_v35, 16  ;;  %v243_v26 = vld [vmem:[%s6428_s27 + $0x74] sm:$0x1] }
  0x5b   : > { %v457_v5 = vrot.slane %v455_v52, 5  ;;  %v4950_v7 = vcombine.low %v434_v48, %v444_v61  ;;  %v2241_v17 = vsel %vm6454_vm4, %v2236_v53, %v2240_v43  ;;  %v2246_v10 = vrot.slane %v2245_v55, 4  ;;  %v5203_v48 = vld [vmem:[%s6428_s27 + $0x18] sm:$0xe] }
  0x5c   : > { %v465_v11 = vshll.u32 %v242_v50, 16  ;;  %v452_v14 = vor.u32 %v451_v2, %v448_v57  ;;  %v461_v18 = vrot.slane %v459_v6, 4  ;;  %v5218_v21 = vrot.slane %v5202_v58, 9  ;;  %v6706_v53 = vld [vmem:[%s6428_s27 + $0x78] sm:$0xf] }
  0x5d   : > { %v2806_v25 = vrot.slane %v2804_v62, 4  ;;  %5650 = vmatmul.mubr.msk.bf16.gmra.mrb[12].mxu1 %vm687_vm3, %v4950_v7  ;;  %v2251_v31 = vsel %vm6454_vm4, %v2246_v10, %v2250_v56  ;;  %v470_v39 = vshrl.u32 %v6674_v0, 16  ;;  %v473_v42 = vshll.u32 %v6674_v0, 16  ;;  %v244_v57 = vld [vmem:[%s6428_s27 + $0x80] sm:$0x1] }
  0x5e   : > { %v467_v38 = vrot.slane %v465_v11, 5  ;;  %v5177_v43 = vcombine.low %v2241_v17, %v2251_v31  ;;  %v453_v44 = vrot.slane %v452_v14, 4  ;;  %v462_v45 = vor.u32 %v461_v18, %v457_v5  ;;  %v5204_v10 = vld [vmem:[%s6428_s27 + $0x24] sm:$0xe] }
  0x5f   : > { %v2805_v47 = vsel %vm6680_vm7, %v5218_v21, %v2804_v62  ;;  %v2808_v49 = vsel %vm6680_vm7, %v2806_v25, %v2807_v63  ;;  %v472_v50 = vrot.slane %v470_v39, 4  ;;  %v475_v51 = vrot.slane %v473_v42, 5  ;;  %v6732_v39 = vld [vmem:[%s6428_s27 + $0x84] sm:$0xf] }
  0x60   : > { %v479_v52 = vshll.u32 %v6687_v29, 16  ;;  %5786 = vmatmul.mubr.msk.bf16.gmra.mrb[12].mxu0 %vm687_vm3, %v5177_v43  ;;  %v458_v15 = vsel %vm6454_vm4, %v453_v44, %v457_v5  ;;  %v463_v62 = vrot.slane %v462_v45, 4  ;;  %v5235_v55 = vcombine.low %v2805_v47, %v2808_v49  ;;  %v6740_v43 = vld [vmem:[%s6428_s27 + $0x88] sm:$0xf] }
  0x61   : > { %v483_v56 = vshrl.u32 %v6687_v29, 16  ;;  %v476_v63 = vor.u32 %v475_v51, %v472_v50  ;;  %v489_v61 = vshll.u32 %v243_v26, 16  ;;  %v5219_v2 = vrot.slane %v5203_v48, 9 }
  0x62   : > { %v481_v58 = vrot.slane %v479_v52, 5  ;;  %v468_v6 = vsel %vm6454_vm4, %v463_v62, %v467_v38  ;;  %5807 = vmatprep.mubr.msk.bf16.mxu0 %vm687_vm3, %v5235_v55  ;;  %v2815_v5 = vsel %vm6680_vm7, %v6497_v30, %v2814_v28  ;;  %v494_v17 = vshrl.u32 %v6706_v53, 16  ;;  %v245_v52 = vld [vmem:[%s6428_s27 + $0x8c] sm:$0x1] }
  0x63   : > { %v485_v7 = vrot.slane %v483_v56, 4  ;;  %v4951_v11 = vcombine.low %v458_v15, %v468_v6  ;;  %v477_v14 = vrot.slane %v476_v63, 4  ;;  %v491_v18 = vrot.slane %v489_v61, 5 }
  0x64   : > { %v2812_v21 = vsel %vm6680_vm7, %v5219_v2, %v2811_v22  ;;  %v496_v38 = vrot.slane %v494_v17, 4  ;;  %v497_v1 = vshll.u32 %v6706_v53, 16  ;;  %v503_v30 = vshll.u32 %v6713_v16, 16  ;;  %v6745_v22 = vld [vmem:[%s8189_s1 + $0xe] sm:$0x3] }
  0x65   : > { %v486_v25 = vor.u32 %v485_v7, %v481_v58  ;;  %v5236_v31 = vcombine.low %v2812_v21, %v2815_v5  ;;  %5653 = vmatprep.mubr.msk.bf16.mxu1 %vm687_vm3, %v4951_v11  ;;  %v482_v28 = vsel %vm6454_vm4, %v477_v14, %v481_v58  ;;  %v507_v60 = vshrl.u32 %v6713_v16, 16  ;;  %v6764_v5 = vld [vmem:[%s6428_s27 + $0x90] sm:$0xf] }
  0x66   : > { %v513_v42 = vshll.u32 %v244_v57, 16  ;;  %v499_v45 = vrot.slane %v497_v1, 5  ;;  %v5220_v47 = vrot.slane %v5204_v10, 9  ;;  %v2818_v26 = vrot.slane %v6504_v46, 5  ;;  %v5205_v57 = vld [vmem:[%s6428_s27 + $0x30] sm:$0xe] }
  0x67   : > { %v487_v44 = vrot.slane %v486_v25, 4  ;;  %v505_v48 = vrot.slane %v503_v30, 5  ;;  %v509_v49 = vrot.slane %v507_v60, 4  ;;  %v2821_v51 = vrot.slane %v6513_v54, 5  ;;  %v6776_v30 = vld [vmem:[%s6428_s27 + $0x94] sm:$0xf] }
  0x68   : > { %v515_v50 = vrot.slane %v513_v42, 5  ;;  %5808 = vmatmul.mubr.msk.bf16.vlgmr.msra.gmra.mrb[0].mxu0 %vm687_vm3, %v5236_v31  ;;  %v500_v62 = vor.u32 %v499_v45, %v496_v38  ;;  %v2819_v55 = vsel %vm6680_vm7, %v5220_v47, %v2818_v26  ;;  %v2820_v56 = vrot.slane %v2818_v26, 4  ;;  %v246_v60 = vld [vmem:[%s6428_s27 + $0x98] sm:$0x1]  ;;  %v5206_v26 = vld [vmem:[%s6428_s27 + $0x3c] sm:$0xe] }
  0x69   : > { %v492_v15 = vsel %vm6454_vm4, %v487_v44, %v491_v18  ;;  %5840 = vmatpush3.bf16.msra.mxu0 %v6464_v41  ;;  %v510_v46 = vor.u32 %v509_v49, %v505_v48  ;;  %v518_v58 = vshrl.u32 %v6732_v39, 16  ;;  %v521_v54 = vshll.u32 %v6732_v39, 16 }
  0x6a   : > { %v4952_v63 = vcombine.low %v482_v28, %v492_v15  ;;  %v501_v61 = vrot.slane %v500_v62, 4  ;;  %v2822_v2 = vsel %vm6680_vm7, %v2820_v56, %v2821_v51  ;;  %v527_v6 = vshll.u32 %v6740_v43, 16  ;;  %6207 = vmatprep.subr.msk.bf16.mxu0 %vm736_vm0, %v6745_v22 }
  0x6b   : > { %v531_v7 = vshrl.u32 %v6740_v43, 16  ;;  %v511_v41 = vrot.slane %v510_v46, 4  ;;  %v5237_v17 = vcombine.low %v2819_v55, %v2822_v2  ;;  %v520_v10 = vrot.slane %v518_v58, 4  ;;  %v6796_v46 = vld [vmem:[%s6428_s27 + $0xa0] sm:$0xf] }
  0x6c   : > { %5654 = vmatmul.mubr.msk.bf16.gmra.mrb[16].mxu1 %vm687_vm3, %v4952_v63  ;;  %v523_v11 = vrot.slane %v521_v54, 5  ;;  %v506_v14 = vsel %vm6454_vm4, %v501_v61, %v505_v48  ;;  %v529_v18 = vrot.slane %v527_v6, 5  ;;  %v537_v25 = vshll.u32 %v245_v52, 16  ;;  %v6785_v52 = vld [vmem:[%s6428_s27 + $0x9c] sm:$0xf] }
  0x6d   : > { %v533_v21 = vrot.slane %v531_v7, 4  ;;  %v516_v31 = vsel %vm6454_vm4, %v511_v41, %v515_v50  ;;  %5811 = vmatprep.mubr.msk.bf16.mxu0 %vm687_vm3, %v5237_v17  ;;  %v5221_v1 = vrot.slane %v5205_v57, 9  ;;  %v2825_v28 = vrot.slane %v6533_v33, 5 }
  0x6e   : > { %v524_v38 = vor.u32 %v523_v11, %v520_v10  ;;  %v4953_v42 = vcombine.low %v506_v14, %v516_v31  ;;  %v539_v45 = vrot.slane %v537_v25, 5  ;;  %v2828_v47 = vrot.slane %v6541_v40, 5  ;;  %v247_v10 = vld [vmem:[%s6428_s27 + $0xa4] sm:$0x1]  ;;  %v5207_v11 = vld [vmem:[%s6428_s27 + $0x48] sm:$0xe] }
  0x6f   : > { %v534_v44 = vor.u32 %v533_v21, %v529_v18  ;;  %v2826_v49 = vsel %vm6680_vm7, %v5221_v1, %v2825_v28  ;;  %v2827_v50 = vrot.slane %v2825_v28, 4  ;;  %v542_v51 = vshrl.u32 %v6764_v5, 16 }
  0x70   : > { %v525_v48 = vrot.slane %v524_v38, 4  ;;  %5657 = vmatprep.mubr.msk.bf16.mxu1 %vm687_vm3, %v4953_v42  ;;  %v545_v15 = vshll.u32 %v6764_v5, 16  ;;  %v551_v62 = vshll.u32 %v6776_v30, 16  ;;  %v555_v40 = vshrl.u32 %v6776_v30, 16 }
  0x71   : > { %v535_v33 = vrot.slane %v534_v44, 4  ;;  %v2829_v56 = vsel %vm6680_vm7, %v2827_v50, %v2828_v47  ;;  %v544_v57 = vrot.slane %v542_v51, 4  ;;  %v561_v63 = vshll.u32 %v246_v60, 16 }
  0x72   : > { %v530_v55 = vsel %vm6454_vm4, %v525_v48, %v529_v18  ;;  %v5238_v54 = vcombine.low %v2826_v49, %v2829_v56  ;;  %v547_v61 = vrot.slane %v545_v15, 5  ;;  %v553_v2 = vrot.slane %v551_v62, 5  ;;  %v6822_v56 = vld [vmem:[%s6428_s27 + $0xac] sm:$0xf] }
  0x73   : > { %v540_v58 = vsel %vm6454_vm4, %v535_v33, %v539_v45  ;;  %v557_v7 = vrot.slane %v555_v40, 4  ;;  %v563_v41 = vrot.slane %v561_v63, 5  ;;  %v5222_v17 = vrot.slane %v5206_v26, 9  ;;  %v6817_v33 = vld [vmem:[%s6428_s27 + $0xa8] sm:$0xf] }
  0x74   : > { %v4954_v6 = vcombine.low %v530_v55, %v540_v58  ;;  %5812 = vmatmul.mubr.msk.bf16.gmra.mrb[4].mxu0 %vm687_vm3, %v5238_v54  ;;  %v548_v14 = vor.u32 %v547_v61, %v544_v57  ;;  %v2832_v18 = vrot.slane %v6558_v20, 5  ;;  %v2835_v21 = vrot.slane %v6563_v34, 5  ;;  %v248_v61 = vld [vmem:[%s6428_s27 + $0xb0] sm:$0x1] }
  0x75   : > { %v566_v25 = vshrl.u32 %v6785_v52, 16  ;;  %v558_v31 = vor.u32 %v557_v7, %v553_v2  ;;  %v569_v38 = vshll.u32 %v6785_v52, 16  ;;  %v575_v1 = vshll.u32 %v6796_v46, 16 }
  0x76   : > { %5658 = vmatmul.mubr.msk.bf16.gmra.mrb[20].mxu1 %vm687_vm3, %v4954_v6  ;;  %v579_v28 = vshrl.u32 %v6796_v46, 16  ;;  %v549_v60 = vrot.slane %v548_v14, 4  ;;  %v2833_v42 = vsel %vm6680_vm7, %v5222_v17, %v2832_v18  ;;  %v2834_v20 = vrot.slane %v2832_v18, 4  ;;  %v6837_v14 = vld [vmem:[%s6428_s27 + $0xb4] sm:$0xf] }
  0x77   : > { %v568_v44 = vrot.slane %v566_v25, 4  ;;  %v559_v34 = vrot.slane %v558_v31, 4  ;;  %v571_v45 = vrot.slane %v569_v38, 5  ;;  %v577_v47 = vrot.slane %v575_v1, 5 }
  0x78   : > { %v581_v26 = vrot.slane %v579_v28, 4  ;;  %v554_v48 = vsel %vm6454_vm4, %v549_v60, %v553_v2  ;;  %v2836_v49 = vsel %vm6680_vm7, %v2834_v20, %v2835_v21  ;;  %v585_v50 = vshll.u32 %v247_v10, 16  ;;  %v5208_v2 = vld [vmem:[%s6428_s27 + $0x54] sm:$0xe] }
  0x79   : > { %v5223_v51 = vrot.slane %v5207_v11, 9  ;;  %v564_v15 = vsel %vm6454_vm4, %v559_v34, %v563_v41  ;;  %v5239_v62 = vcombine.low %v2833_v42, %v2836_v49  ;;  %v572_v40 = vor.u32 %v571_v45, %v568_v44  ;;  %v6846_v42 = vld [vmem:[%s6428_s27 + $0xb8] sm:$0xf]  ;;  %v249_v49 = vld [vmem:[%s6428_s27 + $0xbc] sm:$0x1] }
  0x7a   : > { %v582_v55 = vor.u32 %v581_v26, %v577_v47  ;;  %v4955_v57 = vcombine.low %v554_v48, %v564_v15  ;;  %v587_v63 = vrot.slane %v585_v50, 5  ;;  %v2839_v58 = vrot.slane %v6581_v8, 5 }
  0x7b   : > { %v2842_v54 = vrot.slane %v6589_v23, 5  ;;  %5815 = vmatprep.mubr.msk.bf16.mxu0 %vm687_vm3, %v5239_v62  ;;  %v573_v6 = vrot.slane %v572_v40, 4  ;;  %v590_v41 = vshrl.u32 %v6817_v33, 16  ;;  %v593_v17 = vshll.u32 %v6817_v33, 16 }
  0x7c   : > { %v583_v7 = vrot.slane %v582_v55, 4  ;;  %5661 = vmatprep.mubr.msk.bf16.mxu1 %vm687_vm3, %v4955_v57  ;;  %v2840_v10 = vsel %vm6680_vm7, %v5223_v51, %v2839_v58  ;;  %v2841_v11 = vrot.slane %v2839_v58, 4  ;;  %v599_v8 = vshll.u32 %v6822_v56, 16  ;;  %v5209_v55 = vld [vmem:[%s6428_s27 + $0x60] sm:$0xe] }
  0x7d   : > { %v603_v23 = vshrl.u32 %v6822_v56, 16  ;;  %v578_v18 = vsel %vm6454_vm4, %v573_v6, %v577_v47  ;;  %v592_v25 = vrot.slane %v590_v41, 4  ;;  %v595_v31 = vrot.slane %v593_v17, 5  ;;  %v5210_v6 = vld [vmem:[%s6428_s27 + $0x6c] sm:$0xe] }
  0x7e   : > { %v588_v21 = vsel %vm6454_vm4, %v583_v7, %v587_v63  ;;  %v2843_v1 = vsel %vm6680_vm7, %v2841_v11, %v2842_v54  ;;  %v601_v28 = vrot.slane %v599_v8, 5  ;;  %v609_v34 = vshll.u32 %v248_v61, 16  ;;  %v5146_v11 = vld [vmem:[%s6428_s27 + $0x70] sm:$0xf]  ;;  %v5147_v8 = vld [vmem:[%s6428_s27 + $0x74] sm:$0x1] }
  0x7f   : > { %v4956_v38 = vcombine.low %v578_v18, %v588_v21  ;;  %v605_v60 = vrot.slane %v603_v23, 4  ;;  %v5240_v20 = vcombine.low %v2840_v10, %v2843_v1  ;;  %v596_v44 = vor.u32 %v595_v31, %v592_v25 }
  0x80   : > { %v5224_v45 = vrot.slane %v5208_v2, 9  ;;  %v2846_v26 = vrot.slane %v6612_v4, 5  ;;  %v2849_v48 = vrot.slane %v6618_v12, 5  ;;  %v614_v50 = vshrl.u32 %v6837_v14, 16 }
  0x81   : > { %5662 = vmatmul.mubr.msk.bf16.gmra.mrb[24].mxu1 %vm687_vm3, %v4956_v38  ;;  %v606_v47 = vor.u32 %v605_v60, %v601_v28  ;;  %5816 = vmatmul.mubr.msk.bf16.gmra.mrb[8].mxu0 %vm687_vm3, %v5240_v20  ;;  %v597_v51 = vrot.slane %v596_v44, 4  ;;  %v611_v15 = vrot.slane %v609_v34, 5  ;;  %v617_v62 = vshll.u32 %v6837_v14, 16 }
  0x82   : > { %v623_v40 = vshll.u32 %v6846_v42, 16  ;;  %v2847_v4 = vsel %vm6680_vm7, %v5224_v45, %v2846_v26  ;;  %v2848_v12 = vrot.slane %v2846_v26, 4  ;;  %v616_v63 = vrot.slane %v614_v50, 4 }
  0x83   : > { %v607_v57 = vrot.slane %v606_v47, 4  ;;  %v602_v58 = vsel %vm6454_vm4, %v597_v51, %v601_v28  ;;  %v619_v54 = vrot.slane %v617_v62, 5  ;;  %v627_v2 = vshrl.u32 %v6846_v42, 16  ;;  %v5211_v47 = vld [vmem:[%s6428_s27 + $0x78] sm:$0xe] }
  0x84   : > { %v625_v61 = vrot.slane %v623_v40, 5  ;;  %v2850_v41 = vsel %vm6680_vm7, %v2848_v12, %v2849_v48  ;;  %v633_v17 = vshll.u32 %v249_v49, 16  ;;  %v5225_v10 = vrot.slane %v5209_v55, 9  ;;  %v6282_v51 = vld [vmem:[%s6428_s27] sm:$0xf] }
  0x85   : > { %v612_v7 = vsel %vm6454_vm4, %v607_v57, %v611_v15  ;;  %v5241_v18 = vcombine.low %v2847_v4, %v2850_v41  ;;  %v620_v21 = vor.u32 %v619_v54, %v616_v63  ;;  %v629_v25 = vrot.slane %v627_v2, 4  ;;  %v6884_v15 = vld [vmem:[%s6428_s27 + $0x4] sm:$0xf]  ;;  %v6888_v40 = vld [vmem:[%s6428_s27 + $0x7c] sm:$0xf] }
  0x86   : > { %v4957_v23 = vcombine.low %v602_v58, %v612_v7  ;;  %v635_v31 = vrot.slane %v633_v17, 5  ;;  %v2853_v38 = vrot.slane %v6642_v59, 5  ;;  %v2856_v1 = vrot.slane %v6649_v9, 5  ;;  %v6891_v55 = vld [vmem:[%s6428_s27 + $0x80] sm:$0x1] }
  0x87   : > { %v5226_v28 = vrot.slane %v5210_v6, 9  ;;  %5819 = vmatprep.mubr.msk.bf16.mxu0 %vm687_vm3, %v5241_v18  ;;  %v621_v60 = vrot.slane %v620_v21, 4  ;;  %v630_v20 = vor.u32 %v629_v25, %v625_v61  ;;  %v2860_v44 = vrot.slane %v5146_v11, 5  ;;  %v5152_v57 = vld [vmem:[%s6428_s27 + $0x88] sm:$0xf] }
  0x88   : > { %5665 = vmatprep.mubr.msk.bf16.mxu1 %vm687_vm3, %v4957_v23  ;;  %v2863_v34 = vrot.slane %v5147_v8, 5  ;;  %v2854_v45 = vsel %vm6680_vm7, %v5225_v10, %v2853_v38  ;;  %v2855_v59 = vrot.slane %v2853_v38, 4  ;;  %v4975_v62 = vcombine.low %v6282_v51, %v6884_v15  ;;  %v5153_v54 = vld [vmem:[%s6428_s27 + $0x8c] sm:$0x1]  ;;  %v5155_v17 = vld [vmem:[%s6428_s27 + $0x94] sm:$0xf] }
  0x89   : > { %v626_v9 = vsel %vm6454_vm4, %v621_v60, %v625_v61  ;;  %v631_v26 = vrot.slane %v630_v20, 4  ;;  %v2861_v48 = vsel %vm6680_vm7, %v5226_v28, %v2860_v44  ;;  %v2862_v49 = vrot.slane %v2860_v44, 4  ;;  %v5212_v61 = vld [vmem:[%s6428_s27 + $0x84] sm:$0xe]  ;;  %v5213_v23 = vld [vmem:[%s6428_s27 + $0x90] sm:$0xe] }
  0x8a   : > { %v2857_v50 = vsel %vm6680_vm7, %v2855_v59, %v2856_v1  ;;  %v5227_v58 = vrot.slane %v5211_v47, 9  ;;  %v2867_v7 = vrot.slane %v6888_v40, 5  ;;  %v2870_v41 = vrot.slane %v6891_v55, 5  ;;  %v5156_v25 = vld [vmem:[%s6428_s27 + $0x98] sm:$0x1] }
  0x8b   : > { %v636_v4 = vsel %vm6454_vm4, %v631_v26, %v635_v31  ;;  %v5242_v12 = vcombine.low %v2854_v45, %v2857_v50  ;;  %v2864_v63 = vsel %vm6680_vm7, %v2862_v49, %v2863_v34  ;;  %v5228_v10 = vrot.slane %v5212_v61, 9  ;;  %v5158_v31 = vld [vmem:[%s6428_s27 + $0xa0] sm:$0xf]  ;;  %v5159_v60 = vld [vmem:[%s6428_s27 + $0xa4] sm:$0x1] }
  0x8c   : > { %v4958_v2 = vcombine.low %v626_v9, %v636_v4  ;;  %v5243_v6 = vcombine.low %v2861_v48, %v2864_v63  ;;  %v2874_v11 = vrot.slane %v5152_v57, 5  ;;  %v2877_v8 = vrot.slane %v5153_v54, 5  ;;  %v5214_v20 = vld [vmem:[%s6428_s27 + $0x9c] sm:$0xe]  ;;  %v6284_v44 = vld [vmem:[%s6428_s27 + $0xc] sm:$0xf] }
  0x8d   : > { %5820 = vmatmul.mubr.msk.bf16.gmra.mrb[12].mxu0 %vm687_vm3, %v5242_v12  ;;  %v2868_v18 = vsel %vm6680_vm7, %v5227_v58, %v2867_v7  ;;  %v2869_v21 = vrot.slane %v2867_v7, 4  ;;  %v2881_v28 = vrot.slane %v5155_v17, 5  ;;  %v6918_v34 = vld [vmem:[%s6428_s27 + $0x10] sm:$0xf]  ;;  %v6286_v47 = vld [vmem:[%s6428_s27 + $0x18] sm:$0xf] }
  0x8e   : > { %5666 = vmatmul.mubr.msk.bf16.gmra.mrb[28].mxu1 %vm687_vm3, %v4958_v2  ;;  %5823 = vmatprep.mubr.msk.bf16.mxu0 %vm687_vm3, %v5243_v6  ;;  %v2875_v38 = vsel %vm6680_vm7, %v5228_v10, %v2874_v11  ;;  %v2876_v1 = vrot.slane %v2874_v11, 4  ;;  %v4976_v45 = vcombine.low %v6284_v44, %v6918_v34  ;;  %v6925_v9 = vld [vmem:[%s6428_s27 + $0x1c] sm:$0xf]  ;;  %v5229_v48 = vrot.slane %v5213_v23, 9  ;;  %v5161_v57 = vld [vmem:[%s6428_s27 + $0xac] sm:$0xf] }
  0x8f   : > { %5671 = vmatprep.mubr.msk.bf16.mxu1 %vm687_vm3, %v4975_v62  ;;  %v2871_v59 = vsel %vm6680_vm7, %v2869_v21, %v2870_v41  ;;  %v4977_v26 = vcombine.low %v6286_v47, %v6925_v9  ;;  %v2883_v51 = vrot.slane %v2881_v28, 4  ;;  %v2884_v62 = vrot.slane %v5156_v25, 5  ;;  %v6288_v54 = vld [vmem:[%s8189_s1 + $0x4] sm:$0x3]  ;;  %v5164_v2 = vld [vmem:[%s6428_s27 + $0xb8] sm:$0xf] }
  0x90   : > { %v5244_v49 = vcombine.low %v2868_v18, %v2871_v59  ;;  %v2878_v50 = vsel %vm6680_vm7, %v2876_v1, %v2877_v8  ;;  %v5230_v12 = vrot.slane %v5214_v20, 9  ;;  %v2888_v63 = vrot.slane %v5158_v31, 5  ;;  %v6940_v7 = vld [vmem:[%s8189_s1 + $0x6] sm:$0x3]  ;;  %v5162_v10 = vld [vmem:[%s6428_s27 + $0xb0] sm:$0x1] }
  0x91   : > { %v5245_v4 = vcombine.low %v2875_v38, %v2878_v50  ;;  %v2891_v58 = vrot.slane %v5159_v60, 5  ;;  %v1455_v61 = vsel %vm736_vm0, %v6288_v54, 0  ;;  %v2882_v41 = vsel %vm6680_vm7, %v5229_v48, %v2881_v28  ;;  %v5215_v11 = vld [vmem:[%s6428_s27 + $0xa8] sm:$0xe]  ;;  %v5165_v25 = vld [vmem:[%s6428_s27 + $0xbc] sm:$0x1] }
  0x92   : > { %v2890_v6 = vrot.slane %v2888_v63, 4  ;;  %v2885_v17 = vsel %vm6680_vm7, %v2883_v51, %v2884_v62  ;;  %v2895_v8 = vrot.slane %v5161_v57, 5  ;;  %v2889_v23 = vsel %vm6680_vm7, %v5230_v12, %v2888_v63  ;;  %v5216_v31 = vld [vmem:[%s6428_s27 + $0xb4] sm:$0xe]  ;;  %v6289_v38 = vld [vmem:[%s6428_s27 + $0x24] sm:$0xf] }
  0x93   : > { %v2902_v21 = vrot.slane %v5164_v2, 5  ;;  %v6961_v1 = vld [vmem:[%s6428_s27 + $0x28] sm:$0xf]  ;;  %v5246_v60 = vcombine.low %v2882_v41, %v2885_v17  ;;  %v5231_v44 = vrot.slane %v5215_v11, 9  ;;  %v2898_v59 = vrot.slane %v5162_v10, 5 }
  0x94   : > { %v2892_v18 = vsel %vm6680_vm7, %v2890_v6, %v2891_v58  ;;  %v4978_v28 = vcombine.low %v6289_v38, %v6961_v1  ;;  %v6291_v47 = vld [vmem:[%s6428_s27 + $0x30] sm:$0xf]  ;;  %v2905_v51 = vrot.slane %v5165_v25, 5  ;;  %v5167_v62 = vld [vmem:[%s6428_s27 + $0xc4] sm:$0xf]  ;;  %v2290_v25 = vshrl.u32 %v6888_v40, 16 }
  0x95   : > { %5824 = vmatmul.mubr.msk.bf16.gmra.mrb[16].mxu0 %vm687_vm3, %v5244_v49  ;;  %v5247_v20 = vcombine.low %v2889_v23, %v2892_v18  ;;  %v5232_v49 = vrot.slane %v5216_v31, 9  ;;  %v2904_v50 = vrot.slane %v2902_v21, 4  ;;  %v2896_v57 = vsel %vm6680_vm7, %v5231_v44, %v2895_v8  ;;  %v5217_v12 = vld [vmem:[%s6428_s27 + $0xc0] sm:$0xe]  ;;  %v6293_v41 = vld [vmem:[%s6428_s27 + $0x3c] sm:$0xf] }
  0x96   : > { %5672 = vmatmul.mubr.msk.bf16.vlgmr.msra.gmra.mrb[0].mxu1 %vm687_vm3, %v4976_v45  ;;  %5827 = vmatprep.mubr.msk.bf16.mxu0 %vm687_vm3, %v5245_v4  ;;  %v2897_v45 = vrot.slane %v2895_v8, 4  ;;  %v2909_v63 = vrot.slane %v5167_v62, 5  ;;  %v5233_v6 = vrot.slane %v5217_v12, 9  ;;  %v6986_v17 = vld [vmem:[%s6428_s27 + $0x40] sm:$0xf]  ;;  %v4981_v18 = vcombine.low %v6593_v27, %v6596_v36  ;;  %v6245_v62 = vld [vmem:[%s6428_s27 + $0x24] sm:$0xff]  }
  0x97   : > { %5704 = vmatpush3.bf16.msra.mxu1 %v1455_v61  ;;  %5675 = vmatprep.mubr.msk.bf16.mxu1 %vm687_vm3, %v4977_v26  ;;  %v6966_v26 = vld [vmem:[%s6428_s27 + $0x34] sm:$0xf]  ;;  %v2903_v58 = vsel %vm6680_vm7, %v5232_v49, %v2902_v21  ;;  %v2906_v54 = vsel %vm6680_vm7, %v2904_v50, %v2905_v51  ;;  %v5168_v61 = vld [vmem:[%s6428_s27 + $0xc8] sm:$0x1]  ;;  %v4980_v10 = vcombine.low %v6293_v41, %v6986_v17  ;;  %v2286_v21 = vshll.u32 %v6888_v40, 16 }
  0x98   : > { %6202 = vmatprep.subr.msk.bf16.mxu1 %vm736_vm0, %v6940_v7  ;;  %v4979_v48 = vcombine.low %v6291_v47, %v6966_v26  ;;  %v2899_v4 = vsel %vm6680_vm7, %v2897_v45, %v2898_v59  ;;  %v5249_v11 = vcombine.low %v2903_v58, %v2906_v54  ;;  %v2911_v8 = vrot.slane %v2909_v63, 4  ;;  %v1193_v45 = vld [vmem:[%s6428_s27] sm:$0xe]  ;;  %v1194_v59 = vld [vmem:[%s6428_s27 + $0xc] sm:$0xe] }
  0x99   : > { %v5248_v2 = vcombine.low %v2896_v57, %v2899_v4  ;;  %v2912_v23 = vrot.slane %v5168_v61, 5  ;;  %v2910_v31 = vsel %vm6680_vm7, %v5233_v6, %v2909_v63  ;;  %v7001_v27 = vrot.slane %v2286_v21, 5  ;;  %v1197_v41 = vld [vmem:[%s6428_s27 + $0x30] sm:$0xe] }
  0x9a   : > { %v2292_v36 = vrot.slane %v2290_v25, 4  ;;  %v4983_v44 = vcombine.low %v6653_v19, %v6659_v35  ;;  %v2296_v47 = vshll.u32 %v6891_v55, 16  ;;  %v5007_v19 = vrot.slane %v1193_v45, 9 }
  0x9b   : > { %v2913_v38 = vsel %vm6680_vm7, %v2911_v8, %v2912_v23  ;;  %8210 = vst [vmem:[#allocation3_spill] sm:$0xff] %v7001_v27  ;;  %v5008_v35 = vrot.slane %v1194_v59, 9  ;;  %v1260_v4 = vrot.slane %v6925_v9, 5  ;;  %v1267_v12 = vrot.slane %v6961_v1, 5  ;;  %v1198_v8 = vld [vmem:[%s6428_s27 + $0x3c] sm:$0xe] }
  0x9c   : > { %v5250_v40 = vcombine.low %v2910_v31, %v2913_v38  ;;  %v2293_v49 = vor.u32 %v2292_v36, %v7001_v27  ;;  %v7021_v51 = vrot.slane %v2296_v47, 5  ;;  %v4984_v58 = vcombine.low %v6674_v0, %v6687_v29  ;;  %v1199_v31 = vld [vmem:[%s6428_s27 + $0x48] sm:$0xe]  ;;  %v6299_v59 = vld [vmem:[%s6428_s27 + $0x38] sm:$0x1] }
  0x9d   : > { %5828 = vmatmul.mubr.msk.bf16.gmra.mrb[20].mxu0 %vm687_vm3, %v5246_v60  ;;  %v4982_v60 = vcombine.low %v6622_v24, %v6628_v37  ;;  %v6296_v24 = vld [vmem:[%s6428_s27 + $0x14] sm:$0x1]  ;;  %v4101_v54 = vsel %vm736_vm0, %v6745_v22, 0  ;;  %v4985_v61 = vcombine.low %v6706_v53, %v6713_v16  ;;  %v4986_v6 = vcombine.low %v6732_v39, %v6740_v43  ;;  %v6297_v16 = vld [vmem:[%s6428_s27 + $0x20] sm:$0x1] }
  0x9e   : > { %5676 = vmatmul.mubr.msk.bf16.gmra.mrb[4].mxu1 %vm687_vm3, %v4978_v28  ;;  %5831 = vmatprep.mubr.msk.bf16.mxu0 %vm687_vm3, %v5247_v20  ;;  %v1253_v28 = vrot.slane %v6918_v34, 5  ;;  %v6243_v20 = vld [vmem:[%s6428_s27 + $0x18] sm:$0xff]   ;;  %v6295_v34 = vld [vmem:[%s6428_s27 + $0x8] sm:$0x1]  ;;  %v1256_v37 = vrot.slane %v6296_v24, 5  ;;  %8211 = vst [vmem:[#allocation4_spill] sm:$0xff] %v7021_v51  ;;  %v4987_v9 = vcombine.low %v6764_v5, %v6776_v30 }
  0x9f   : > { %5679 = vmatprep.mubr.msk.bf16.mxu1 %vm687_vm3, %v4979_v48  ;;  %v1246_v48 = vrot.slane %v6884_v15, 5  ;;  %v1249_v50 = vrot.slane %v6295_v34, 5  ;;  %v1195_v15 = vld [vmem:[%s6428_s27 + $0x18] sm:$0xe]  ;;  %v7026_v63 = vrot.slane %v2293_v49, 4  ;;  %v1263_v22 = vrot.slane %v6297_v16, 5 }
  0xa0   : > { %v1255_v55 = vrot.slane %v1253_v28, 4  ;;  %v5009_v1 = vrot.slane %v1195_v15, 9  ;;  %v7048_v29 = vsel %vm6680_vm7, %v5008_v35, %v1253_v28  ;;  %v1269_v25 = vrot.slane %v1267_v12, 4  ;;  %v5332_v24 = vld [vmem:[%s6428_s27 + $0x18] sm:$0xf] }
  0xa1   : > { %v1248_v57 = vrot.slane %v1246_v48, 4  ;;  %8212 = vst [vmem:[#allocation5_spill] sm:$0xff] %v7026_v63  ;;  %v7044_v0 = vsel %vm6680_vm7, %v5007_v19, %v1246_v48  ;;  %v1277_v47 = vrot.slane %v6299_v59, 5  ;;  %v7085_v49 = vsel %vm736_vm0, %v6940_v7, 0  ;;  %v5333_v7 = vld [vmem:[%s6428_s27 + $0x1c] sm:$0xf] }
  0xa2   : > { %v7052_v53 = vsel %vm6680_vm7, %v1255_v55, %v1256_v37  ;;  %v7089_v34 = vsel %vm6680_vm7, %v5009_v1, %v1260_v4  ;;  %v6249_v37 = vld [vmem:[%s6428_s27 + $0x3c] sm:$0xff]   ;;  %v5012_v35 = vrot.slane %v1198_v8, 9  ;;  %v6300_v55 = vld [vmem:[%s6428_s27 + $0x44] sm:$0x1]  ;;  %v3622_v8 = vshll.u32 %v5332_v24, 16 }
  0xa3   : > { %v7063_v23 = vsel %vm6680_vm7, %v1248_v57, %v1249_v50  ;;  %v1200_v50 = vld [vmem:[%s6428_s27 + $0x54] sm:$0xe]  ;;  %v1284_v15 = vrot.slane %v6300_v55, 5  ;;  %v5336_v39 = vld [vmem:[%s6428_s27 + $0x28] sm:$0xf] }
  0xa4   : > { %v6307_v5 = vld [vmem:[%s6428_s27 + $0x70] sm:$0xf] }
  0xa5   : > { %5832 = vmatmul.mubr.msk.bf16.gmra.mrb[24].mxu0 %vm687_vm3, %v5248_v2  ;;  %v1196_v2 = vld [vmem:[%s6428_s27 + $0x24] sm:$0xe]  ;;  %v1309_v30 = vrot.slane %v6307_v5, 5 }
  0xa6   : > { %5680 = vmatmul.mubr.msk.bf16.gmra.mrb[8].mxu1 %vm687_vm3, %v4980_v10  ;;  %5835 = vmatprep.mubr.msk.bf16.mxu0 %vm687_vm3, %v5249_v11  ;;  %v1274_v10 = vrot.slane %v6966_v26, 5  ;;  %v6247_v11 = vld [vmem:[%s6428_s27 + $0x30] sm:$0xff]   ;;  %v5010_v21 = vrot.slane %v1196_v2, 9 }
  0xa7   : > { %5683 = vmatprep.mubr.msk.bf16.mxu1 %vm687_vm3, %v4981_v18  ;;  %v7059_v26 = vld [vmem:[%s8189_s1 + $0x10] sm:$0x3]  ;;  %v1262_v18 = vrot.slane %v1260_v4, 4  ;;  %v1311_v48 = vrot.slane %v1309_v30, 4 }
  0xa8   : > { %v1276_v45 = vrot.slane %v1274_v10, 4  ;;  %v7096_v19 = vsel %vm6680_vm7, %v5010_v21, %v1267_v12  ;;  %v3632_v21 = vshrl.u32 %v5333_v7, 16 }
  0xa9   : > { %v7105_v4 = vsel %vm6680_vm7, %v1262_v18, %v1263_v22  ;;  %v3619_v22 = vshrl.u32 %v5332_v24, 16  ;;  %v3628_v18 = vshll.u32 %v5333_v7, 16  ;;  %v5335_v24 = vld [vmem:[%s6428_s27 + $0x24] sm:$0xf] }
  0xaa   : > { %v7118_v1 = vsel %vm6680_vm7, %v1276_v45, %v1277_v47 }
  0xab   : > { %v3621_v43 = vrot.slane %v3619_v22, 4  ;;  %v7160_v7 = vrot.slane %v3628_v18, 5  ;;  %v3646_v22 = vshll.u32 %v5335_v24, 16  ;;  %v3656_v18 = vshrl.u32 %v5336_v39, 16 }
  0xad   : > { %5836 = vmatmul.mubr.msk.bf16.gmra.mrb[28].mxu0 %vm687_vm3, %v5250_v40  ;;  %v6298_v40 = vld [vmem:[%s6428_s27 + $0x2c] sm:$0x1]  ;;  %v3648_v27 = vrot.slane %v3646_v22, 5 }
  0xae   : > { %5684 = vmatmul.mubr.msk.bf16.gmra.mrb[12].mxu1 %vm687_vm3, %v4982_v60  ;;  %5841 = vmatprep.mubr.msk.bf16.mxu0 %vm687_vm3, %v6243_v20  ;;  %v1270_v28 = vrot.slane %v6298_v40, 5  ;;  %v1281_v60 = vrot.slane %v6986_v17, 5  ;;  %v6303_v40 = vld [vmem:[%s6428_s27 + $0x50] sm:$0x1]  ;;  %v6308_v17 = vld [vmem:[%s6428_s27 + $0x74] sm:$0x1] }
  0xaf   : > { %5687 = vmatprep.mubr.msk.bf16.mxu1 %vm687_vm3, %v4983_v44  ;;  %v5011_v44 = vrot.slane %v1197_v41, 9  ;;  %v5014_v41 = vrot.slane %v1200_v50, 9  ;;  %v1201_v50 = vld [vmem:[%s6428_s27 + $0x60] sm:$0xe]  ;;  %v5337_v20 = vld [vmem:[%s6428_s27 + $0x2c] sm:$0x1] }
  0xb0   : > { %v1283_v12 = vrot.slane %v1281_v60, 4  ;;  %v7131_v45 = vsel %vm6680_vm7, %v5012_v35, %v1281_v60  ;;  %v6304_v35 = vld [vmem:[%s6428_s27 + $0x5c] sm:$0x1] }
  0xb1   : > { %v7114_v2 = vsel %vm6680_vm7, %v5011_v44, %v1274_v10  ;;  %v1298_v55 = vrot.slane %v6304_v35, 5  ;;  %v1202_v35 = vld [vmem:[%s6428_s27 + $0x6c] sm:$0xe] }
  0xb2   : > { %v7135_v59 = vsel %vm6680_vm7, %v1283_v12, %v1284_v15  ;;  %v6305_v15 = vld [vmem:[%s6428_s27 + $0x64] sm:$0xf]  ;;  %v3634_v12 = vrot.slane %v3632_v21, 4  ;;  %v5016_v5 = vrot.slane %v1202_v35, 9 }
  0xb3   : > { %v6255_v21 = vld [vmem:[%s6428_s27 + $0x60] sm:$0xff]  }
  0xb5   : > { %5842 = vmatmul.mubr.msk.bf16.vlgmr.msra.gmra.mrb[0].mxu0 %vm687_vm3, %v6245_v62  ;;  %v6301_v62 = vld [vmem:[%s6428_s27 + $0x4c] sm:$0xf] }
  0xb6   : > { %5688 = vmatmul.mubr.msk.bf16.gmra.mrb[16].mxu1 %vm687_vm3, %v4984_v58  ;;  %5874 = vmatpush3.bf16.msra.mxu0 %v4101_v54  ;;  %v1288_v57 = vrot.slane %v6301_v62, 5  ;;  %v7109_v58 = vsel %vm6680_vm7, %v1269_v25, %v1270_v28  ;;  %v5013_v54 = vrot.slane %v1199_v31, 9  ;;  %v1291_v28 = vrot.slane %v6303_v40, 5 }
  0xb7   : > { %5691 = vmatprep.mubr.msk.bf16.mxu1 %vm687_vm3, %v4985_v61  ;;  %5845 = vmatprep.mubr.msk.bf16.mxu0 %vm687_vm3, %v6247_v11  ;;  %v6251_v61 = vld [vmem:[%s6428_s27 + $0x48] sm:$0xff]   ;;  %v6302_v11 = vld [vmem:[%s6428_s27 + $0x58] sm:$0xf]  ;;  %v1302_v62 = vrot.slane %v6305_v15, 5  ;;  %v5339_v15 = vld [vmem:[%s6428_s27 + $0x34] sm:$0xf] }
  0xb8   : > { %6208 = vmatprep.subr.msk.bf16.mxu0 %vm736_vm0, %v7059_v26  ;;  %v1295_v16 = vrot.slane %v6302_v11, 5  ;;  %v1290_v31 = vrot.slane %v1288_v57, 4  ;;  %v7139_v47 = vsel %vm6680_vm7, %v5013_v54, %v1288_v57  ;;  %v5334_v57 = vld [vmem:[%s6428_s27 + $0x20] sm:$0x1]  ;;  %v5338_v54 = vld [vmem:[%s6428_s27 + $0x30] sm:$0xf] }
  0xb9   : > { %v5015_v11 = vrot.slane %v1201_v50, 9  ;;  %v3670_v50 = vshll.u32 %v5338_v54, 16  ;;  %v3638_v25 = vshll.u32 %v5334_v57, 16  ;;  %v3676_v36 = vshll.u32 %v5339_v15, 16 }
  0xba   : > { %v7150_v60 = vsel %vm6680_vm7, %v5014_v41, %v1295_v16  ;;  %v7166_v41 = vsel %vm6680_vm7, %v1290_v31, %v1291_v28  ;;  %v1304_v31 = vrot.slane %v1302_v62, 4  ;;  %v3667_v28 = vshrl.u32 %v5338_v54, 16 }
  0xbb   : > { %v7208_v35 = vrot.slane %v3676_v36, 5 }
  0xbd   : > { %5846 = vmatmul.mubr.msk.bf16.gmra.mrb[4].mxu0 %vm687_vm3, %v6249_v37  ;;  %v1297_v37 = vrot.slane %v1295_v16, 4  ;;  %v6306_v16 = vld [vmem:[%s6428_s27 + $0x68] sm:$0x1] }
  0xbe   : > { %5692 = vmatmul.mubr.msk.bf16.gmra.mrb[20].mxu1 %vm687_vm3, %v4986_v6  ;;  %5849 = vmatprep.mubr.msk.bf16.mxu0 %vm687_vm3, %v6251_v61  ;;  %v3624_v6 = vrot.slane %v3622_v8, 5  ;;  %v6253_v61 = vld [vmem:[%s6428_s27 + $0x54] sm:$0xff]   ;;  %v1305_v40 = vrot.slane %v6306_v16, 5  ;;  %v3652_v8 = vshll.u32 %v5336_v39, 16  ;;  %v3635_v16 = vor.u32 %v3634_v12, %v7160_v7 }
  0xbf   : > { %5695 = vmatprep.mubr.msk.bf16.mxu1 %vm687_vm3, %v4987_v9  ;;  %v3643_v9 = vshrl.u32 %v5335_v24, 16  ;;  %v7175_v44 = vsel %vm6680_vm7, %v1297_v37, %v1298_v55  ;;  %v1312_v24 = vrot.slane %v6308_v17, 5  ;;  %v3680_v39 = vshrl.u32 %v5339_v15, 16 }
  0xc0   : > { %v3625_v10 = vor.u32 %v3624_v6, %v3621_v43  ;;  %v7181_v37 = vrot.slane %v3652_v8, 5  ;;  %v3658_v55 = vrot.slane %v3656_v18, 4  ;;  %v8213_v43 = vcombine.low %v6785_v52, %v6796_v46  ;;  %v6309_v8 = vld [vmem:[%s6428_s27 + $0x7c] sm:$0xf]  ;;  %v7217_v18 = vld [vmem:[%s6428_s27 + $0x38] sm:$0x1] }
  0xc1   : > { %v3645_v38 = vrot.slane %v3643_v9, 4  ;;  %v7190_v17 = vsel %vm6680_vm7, %v5015_v11, %v1302_v62  ;;  %v7194_v57 = vsel %vm6680_vm7, %v1304_v31, %v1305_v40  ;;  %v3669_v6 = vrot.slane %v3667_v28, 4  ;;  %8215 = vst [vmem:[#allocation6_spill] sm:$0xff] %v7217_v18 }
  0xc2   : > { %v3672_v12 = vrot.slane %v3670_v50, 5  ;;  %v8214_v52 = vcombine.low %v6817_v33, %v6822_v56  ;;  %v3626_v46 = vrot.slane %v3625_v10, 4  ;;  %v3636_v54 = vrot.slane %v3635_v16, 4  ;;  %v6257_v33 = vld [vmem:[%s6428_s27 + $0x6c] sm:$0xff]   ;;  %v1204_v16 = vld [vmem:[%s6428_s27 + $0x84] sm:$0xe] }
  0xc3   : > { %v3662_v62 = vshll.u32 %v5337_v20, 16  ;;  %v7202_v11 = vsel %vm6680_vm7, %v5016_v5, %v1309_v30  ;;  %v7206_v40 = vsel %vm6680_vm7, %v1311_v48, %v1312_v24  ;;  %v3682_v9 = vrot.slane %v3680_v39, 4  ;;  %v6258_v48 = vld [vmem:[%s6428_s27 + $0x78] sm:$0xff]  }
  0xc4   : > { %v3649_v10 = vor.u32 %v3648_v27, %v3645_v38  ;;  %v3659_v20 = vor.u32 %v3658_v55, %v7181_v37  ;;  %v1316_v30 = vrot.slane %v6309_v8, 5  ;;  %v3673_v38 = vor.u32 %v3672_v12, %v3669_v6  ;;  %v5341_v5 = vld [vmem:[%s6428_s27 + $0x3c] sm:$0xf] }
  0xc5   : > { %5850 = vmatmul.mubr.msk.bf16.gmra.mrb[8].mxu0 %vm687_vm3, %v6253_v61  ;;  %v3640_v61 = vrot.slane %v3638_v25, 5  ;;  %v1203_v25 = vld [vmem:[%s6428_s27 + $0x78] sm:$0xe]  ;;  %v7233_v50 = vrot.slane %v3662_v62, 5  ;;  %v3683_v39 = vor.u32 %v3682_v9, %v7208_v35  ;;  %v3686_v55 = vshll.u32 %v7217_v18, 16 }
  0xc6   : > { %5696 = vmatmul.mubr.msk.bf16.gmra.mrb[24].mxu1 %vm687_vm3, %v8213_v43  ;;  %5853 = vmatprep.mubr.msk.bf16.mxu0 %vm687_vm3, %v6255_v21  ;;  %v3631_v21 = vsel %vm6454_vm4, %v3626_v46, %v7160_v7  ;;  %v5017_v24 = vrot.slane %v1203_v25, 9  ;;  %v6310_v43 = vld [vmem:[%s6428_s27 + $0x88] sm:$0xf]  ;;  %v7241_v7 = vld [vmem:[%s6428_s27 + $0x40] sm:$0xf]  ;;  %v3650_v12 = vrot.slane %v3649_v10, 4  ;;  %v8217_v62 = vcombine.low %v6837_v14, %v6846_v42 }
  0xc7   : > { %5699 = vmatprep.mubr.msk.bf16.mxu1 %vm687_vm3, %v8214_v52  ;;  %v3641_v31 = vsel %vm6454_vm4, %v3636_v54, %v3640_v61  ;;  %v1323_v6 = vrot.slane %v6310_v43, 5  ;;  %8216 = vst [vmem:[#allocation7_spill] sm:$0xff] %v7241_v7  ;;  %v3660_v52 = vrot.slane %v3659_v20, 4  ;;  %v1318_v46 = vrot.slane %v1316_v30, 4  ;;  %v6311_v54 = vld [vmem:[%s6428_s27 + $0x80] sm:$0x1] }
  0xc8   : > { %v1319_v61 = vrot.slane %v6311_v54, 5  ;;  %v3674_v9 = vrot.slane %v3673_v38, 4  ;;  %v5018_v25 = vrot.slane %v1204_v16, 9  ;;  %v3691_v8 = vshrl.u32 %v5341_v5, 16  ;;  %v6259_v10 = vld [vmem:[%s6428_s27 + $0x84] sm:$0xff]  }
  0xc9   : > { %v3694_v43 = vshll.u32 %v5341_v5, 16  ;;  %v7255_v20 = vcombine.low %v3631_v21, %v3641_v31  ;;  %v7259_v14 = vsel %vm736_vm0, %v7059_v26, 0  ;;  %v3704_v38 = vshrl.u32 %v7241_v7, 16  ;;  %v6260_v21 = vld [vmem:[%s6428_s27 + $0x90] sm:$0xff]   ;;  %v6316_v18 = vld [vmem:[%s6428_s27 + $0xa0] sm:$0xf] }
  0xca   : > { %v3684_v16 = vrot.slane %v3683_v39, 4  ;;  %v3688_v5 = vrot.slane %v3686_v55, 5  ;;  %v1325_v54 = vrot.slane %v1323_v6, 4  ;;  %v3655_v31 = vsel %vm6454_vm4, %v3650_v12, %v7181_v37 }
  0xcb   : > { %v3665_v26 = vsel %vm6454_vm4, %v3660_v52, %v7233_v50  ;;  %v7274_v39 = vsel %vm6680_vm7, %v5017_v24, %v1316_v30  ;;  %v7278_v55 = vsel %vm6680_vm7, %v1318_v46, %v1319_v61  ;;  %v3679_v37 = vsel %vm6454_vm4, %v3674_v9, %v7208_v35  ;;  %v5347_v30 = vld [vmem:[%s6428_s27 + $0x54] sm:$0xf]  ;;  %v7295_v24 = vld [vmem:[%s6428_s27 + $0x58] sm:$0xf]  ;;  %v7300_v61 = vld [vmem:[%s6428_s27 + $0x90] sm:$0xe] }
  0xcc   : > { %v7291_v12 = vsel %vm6680_vm7, %v5018_v25, %v1323_v6  ;;  %v3693_v50 = vrot.slane %v3691_v8, 4  ;;  %v3696_v52 = vrot.slane %v3694_v43, 5  ;;  %v3706_v46 = vrot.slane %v3704_v38, 4 }
  0xcd   : > { %5854 = vmatmul.mubr.msk.bf16.gmra.mrb[12].mxu0 %vm687_vm3, %v6257_v33  ;;  %v8218_v33 = vcombine.low %v7044_v0, %v7063_v23  ;;  %v6312_v0 = vld [vmem:[%s6428_s27 + $0x8c] sm:$0x1]  ;;  %v3689_v36 = vsel %vm6454_vm4, %v3684_v16, %v3688_v5  ;;  %v3739_v25 = vshrl.u32 %v5347_v30, 16  ;;  %v3742_v8 = vshll.u32 %v5347_v30, 16 }
  0xce   : > { %5700 = vmatmul.mubr.msk.bf16.gmra.mrb[28].mxu1 %vm687_vm3, %v8217_v62  ;;  %5857 = vmatprep.mubr.msk.bf16.mxu0 %vm687_vm3, %v6258_v48  ;;  %v3700_v48 = vshll.u32 %v7241_v7, 16  ;;  %v1326_v23 = vrot.slane %v6312_v0, 5  ;;  %v5344_v62 = vld [vmem:[%s6428_s27 + $0x48] sm:$0xf]  ;;  %v7284_v0 = vld [vmem:[%s6428_s27 + $0x4c] sm:$0xf]  ;;  %v8220_v38 = vcombine.low %v7048_v29, %v7052_v53  ;;  %v7318_v16 = vcombine.low %v3655_v31, %v3665_v26 }
  0xcf   : > { %5705 = vmatprep.mubr.msk.bf16.mxu1 %vm687_vm3, %v8218_v33  ;;  %v7281_v33 = vld [vmem:[%s6428_s27 + $0x44] sm:$0x1]  ;;  %v3715_v27 = vshrl.u32 %v5344_v62, 16  ;;  %v3718_v15 = vshll.u32 %v5344_v62, 16  ;;  %v3724_v6 = vshll.u32 %v7284_v0, 16  ;;  %v3728_v9 = vshrl.u32 %v7284_v0, 16 }
  0xd0   : > { %8219 = vst [vmem:[#allocation8_spill] sm:$0xff] %v7281_v33  ;;  %v7297_v28 = vrot.slane %v3700_v48, 5  ;;  %v7306_v35 = vsel %vm6680_vm7, %v1325_v54, %v1326_v23  ;;  %v3748_v43 = vshll.u32 %v7295_v24, 16  ;;  %v3752_v48 = vshrl.u32 %v7295_v24, 16  ;;  %v5350_v31 = vld [vmem:[%s6428_s27 + $0x60] sm:$0xf] }
  0xd1   : > { %v3710_v5 = vshll.u32 %v7281_v33, 16  ;;  %v5019_v54 = vrot.slane %v7300_v61, 9  ;;  %v8221_v23 = vcombine.low %v7089_v34, %v7105_v4  ;;  %v7329_v29 = vcombine.low %v3679_v37, %v3689_v36  ;;  %v6261_v26 = vld [vmem:[%s6428_s27 + $0x9c] sm:$0xff]   ;;  %v6262_v30 = vld [vmem:[%s6428_s27 + $0xa8] sm:$0xff]  }
  0xd2   : > { %v3697_v53 = vor.u32 %v3696_v52, %v3693_v50  ;;  %v3717_v62 = vrot.slane %v3715_v27, 4  ;;  %v7340_v34 = vrot.slane %v3724_v6, 5  ;;  %v3730_v4 = vrot.slane %v3728_v9, 4  ;;  %v6313_v36 = vld [vmem:[%s8189_s1 + $0x8] sm:$0x3] }
  0xd3   : > { %v3741_v27 = vrot.slane %v3739_v25, 4  ;;  %v3744_v37 = vrot.slane %v3742_v8, 5  ;;  %v7349_v50 = vrot.slane %v3748_v43, 5  ;;  %v3754_v52 = vrot.slane %v3752_v48, 4  ;;  %v6314_v6 = vld [vmem:[%s6428_s27 + $0x94] sm:$0xf] }
  0xd4   : > { %v7355_v9 = vld [vmem:[%s6428_s27 + $0x64] sm:$0xf]  ;;  %v3763_v61 = vshrl.u32 %v5350_v31, 16  ;;  %v7357_v22 = vrot.slane %v3697_v53, 4  ;;  %v1337_v25 = vrot.slane %v6316_v18, 5  ;;  %v3731_v43 = vor.u32 %v3730_v4, %v7340_v34 }
  0xd5   : > { %5858 = vmatmul.mubr.msk.bf16.gmra.mrb[16].mxu0 %vm687_vm3, %v6259_v10  ;;  %8222 = vst [vmem:[#allocation9_spill] sm:$0xff] %v7355_v9  ;;  %v3766_v10 = vshll.u32 %v5350_v31, 16  ;;  %v3745_v31 = vor.u32 %v3744_v37, %v3741_v27  ;;  %v3755_v53 = vor.u32 %v3754_v52, %v7349_v50  ;;  %v8223_v18 = vcombine.low %v7096_v19, %v7109_v58  ;;  %v6263_v37 = vld [vmem:[%s6428_s27 + $0xb4] sm:$0xff]  }
  0xd6   : > { %5706 = vmatmul.mubr.msk.bf16.vlgmr.msra.gmra.mrb[0].mxu1 %vm687_vm3, %v8220_v38  ;;  %5861 = vmatprep.mubr.msk.bf16.mxu0 %vm687_vm3, %v6260_v21  ;;  %v3720_v21 = vrot.slane %v3718_v15, 5  ;;  %v7338_v38 = vld [vmem:[%s6428_s27 + $0x50] sm:$0x1]  ;;  %v7347_v15 = vld [vmem:[%s6428_s27 + $0x5c] sm:$0x1]  ;;  %v8224_v27 = vcombine.low %v7114_v2, %v7118_v1  ;;  %v1339_v52 = vrot.slane %v1337_v25, 4 }
  0xd7   : > { %5738 = vmatpush3.bf16.msra.mxu1 %v7085_v49  ;;  %5709 = vmatprep.mubr.msk.bf16.mxu1 %vm687_vm3, %v8221_v23  ;;  %v3707_v49 = vor.u32 %v3706_v46, %v7297_v28  ;;  %v7351_v46 = vrot.slane %v3710_v5, 5  ;;  %v1330_v23 = vrot.slane %v6314_v6, 5  ;;  %v3734_v48 = vshll.u32 %v7338_v38, 16  ;;  %v1206_v5 = vld [vmem:[%s6428_s27 + $0x9c] sm:$0xe] }
  0xd8   : > { %6204 = vmatprep.subr.msk.bf16.mxu1 %vm736_vm0, %v6313_v36  ;;  %v6315_v36 = vld [vmem:[%s6428_s27 + $0x98] sm:$0x1]  ;;  %v3721_v7 = vor.u32 %v3720_v21, %v3717_v62  ;;  %v3758_v6 = vshll.u32 %v7347_v15, 16  ;;  %v3776_v62 = vshrl.u32 %v7355_v9, 16  ;;  %v3768_v4 = vrot.slane %v3766_v10, 5 }
  0xd9   : > { %v1333_v33 = vrot.slane %v6315_v36, 5  ;;  %v3708_v8 = vrot.slane %v3707_v49, 4  ;;  %v3772_v36 = vshll.u32 %v7355_v9, 16  ;;  %v7376_v21 = vsel %vm6680_vm7, %v5019_v54, %v1330_v23  ;;  %v7387_v2 = vld [vmem:[%s6428_s27 + $0x68] sm:$0x1] }
  0xda   : > { %v3765_v49 = vrot.slane %v3763_v61, 4  ;;  %v3722_v19 = vrot.slane %v3721_v7, 4  ;;  %v5020_v58 = vrot.slane %v1206_v5, 9  ;;  %v3732_v3 = vrot.slane %v3731_v43, 4  ;;  %8225 = vst [vmem:[#allocation10_spill] sm:$0xff] %v7387_v2  ;;  %v6264_v5 = vld [vmem:[%s6428_s27 + $0xc0] sm:$0xff]  }
  0xdb   : > { %v3736_v54 = vrot.slane %v3734_v48, 5  ;;  %v3760_v63 = vrot.slane %v3758_v6, 5  ;;  %v1344_v61 = vrot.slane %v6822_v56, 5  ;;  %v3746_v10 = vrot.slane %v3745_v31, 4  ;;  %v1208_v31 = vld [vmem:[%s6428_s27 + $0xb4] sm:$0xe] }
  0xdc   : > { %v3756_v51 = vrot.slane %v3755_v53, 4  ;;  %v7389_v1 = vrot.slane %v3772_v36, 5  ;;  %v3778_v7 = vrot.slane %v3776_v62, 4  ;;  %v3703_v43 = vsel %vm6454_vm4, %v7357_v22, %v7297_v28  ;;  %v6318_v62 = vld [vmem:[%s6428_s27 + $0xb0] sm:$0x1] }
  0xdd   : > { %5862 = vmatmul.mubr.msk.bf16.gmra.mrb[20].mxu0 %vm687_vm3, %v6261_v26  ;;  %v1332_v26 = vrot.slane %v1330_v23, 4  ;;  %v1207_v23 = vld [vmem:[%s6428_s27 + $0xa8] sm:$0xe]  ;;  %v3713_v48 = vsel %vm6454_vm4, %v3708_v8, %v7351_v46  ;;  %v3769_v6 = vor.u32 %v3768_v4, %v3765_v49  ;;  %v3727_v53 = vsel %vm6454_vm4, %v3722_v19, %v7340_v34  ;;  %v5353_v46 = vld [vmem:[%s6428_s27 + $0x6c] sm:$0xf] }
  0xde   : > { %5710 = vmatmul.mubr.msk.bf16.gmra.mrb[4].mxu1 %vm687_vm3, %v8223_v18  ;;  %5865 = vmatprep.mubr.msk.bf16.mxu0 %vm687_vm3, %v6262_v30  ;;  %v6317_v18 = vld [vmem:[%s6428_s27 + $0xa4] sm:$0x1]  ;;  %v7409_v36 = vsel %vm6680_vm7, %v5020_v58, %v1337_v25  ;;  %v5021_v28 = vrot.slane %v1207_v23, 9  ;;  %v1346_v8 = vrot.slane %v1344_v61, 4  ;;  %v3782_v49 = vshll.u32 %v7387_v2, 16 }
  0xdf   : > { %5713 = vmatprep.mubr.msk.bf16.mxu1 %vm687_vm3, %v8224_v27  ;;  %v1340_v30 = vrot.slane %v6317_v18, 5  ;;  %v7401_v56 = vsel %vm6680_vm7, %v1332_v26, %v1333_v33  ;;  %v3737_v33 = vsel %vm6454_vm4, %v3732_v3, %v3736_v54  ;;  %v1347_v26 = vrot.slane %v6318_v62, 5  ;;  %v5356_v18 = vld [vmem:[%s6428_s27 + $0x78] sm:$0xf]  ;;  %v7464_v54 = vld [vmem:[%s6428_s27 + $0xbc] sm:$0x1] }
  0xe0   : > { %v3751_v34 = vsel %vm6454_vm4, %v3746_v10, %v7349_v50  ;;  %v3761_v25 = vsel %vm6454_vm4, %v3756_v51, %v3760_v63  ;;  %v3779_v4 = vor.u32 %v3778_v7, %v7389_v1  ;;  %v5022_v27 = vrot.slane %v1208_v31, 9  ;;  %v7438_v51 = vld [vmem:[%s6428_s27 + $0x70] sm:$0xf]  ;;  %v7468_v10 = vld [vmem:[%s6428_s27 + $0x7c] sm:$0xf] }
  0xe1   : > { %v7413_v22 = vsel %vm6680_vm7, %v1339_v52, %v1340_v30  ;;  %v8227_v3 = vcombine.low %v7131_v45, %v7135_v59  ;;  %v7434_v19 = vrot.slane %v3769_v6, 4  ;;  %v1351_v50 = vrot.slane %v6846_v42, 5  ;;  %8228 = vst [vmem:[#allocation12_spill] sm:$0xff] %v7438_v51  ;;  %8230 = vst [vmem:[#allocation13_spill] sm:$0xff] %v7468_v10  ;;  %v5359_v7 = vld [vmem:[%s6428_s27 + $0x84] sm:$0xf] }
  0xe2   : > { %8226 = vst [vmem:[#allocation11_spill] sm:$0xff] %v7413_v22  ;;  %v3787_v63 = vshrl.u32 %v5353_v46, 16  ;;  %v8229_v45 = vcombine.low %v7139_v47, %v7166_v41  ;;  %v7446_v58 = vcombine.low %v3727_v53, %v3737_v33  ;;  %v7452_v42 = vsel %vm6680_vm7, %v5021_v28, %v1344_v61  ;;  %v6265_v61 = vld [vmem:[%s6428_s27 + $0xcc] sm:$0xff]   ;;  %v7480_v31 = vld [vmem:[%s6428_s27 + $0x88] sm:$0xf] }
  0xe3   : > { %v7455_v30 = vcombine.low %v3751_v34, %v3761_v25  ;;  %v7459_v47 = vsel %vm6680_vm7, %v1346_v8, %v1347_v26  ;;  %v7461_v41 = vrot.slane %v3782_v49, 5  ;;  %v3796_v6 = vshll.u32 %v7438_v51, 16  ;;  %8231 = vst [vmem:[#allocation14_spill] sm:$0xff] %v7480_v31  ;;  %v5362_v62 = vld [vmem:[%s6428_s27 + $0x90] sm:$0xf] }
  0xe4   : > { %v7486_v28 = vrot.slane %v1351_v50, 4  ;;  %v7488_v33 = vrot.slane %v3787_v63, 4  ;;  %v3800_v8 = vshrl.u32 %v7438_v51, 16  ;;  %v3811_v26 = vshrl.u32 %v5356_v18, 16  ;;  %v7495_v25 = vld [vmem:[%s6428_s27 + $0x94] sm:$0xf] }
  0xe5   : > { %5866 = vmatmul.mubr.msk.bf16.gmra.mrb[24].mxu0 %vm687_vm3, %v6263_v37  ;;  %v7432_v37 = vcombine.low %v3703_v43, %v3713_v48  ;;  %v7476_v43 = vsel %vm6680_vm7, %v5022_v27, %v1351_v50  ;;  %v3790_v48 = vshll.u32 %v5353_v46, 16  ;;  %v3814_v49 = vshll.u32 %v5356_v18, 16  ;;  %8232 = vst [vmem:[#allocation15_spill] sm:$0xff] %v7495_v25  ;;  %v7533_v2 = vld [vmem:[%s6428_s27 + $0x8c] sm:$0x1] }
  0xe6   : > { %5714 = vmatmul.mubr.msk.bf16.gmra.mrb[8].mxu1 %vm687_vm3, %v8227_v3  ;;  %5869 = vmatprep.mubr.msk.bf16.mxu0 %vm687_vm3, %v6264_v5  ;;  %v7472_v5 = vrot.slane %v3779_v4, 4  ;;  %v3820_v46 = vshll.u32 %v7468_v10, 16  ;;  %v3824_v34 = vshrl.u32 %v7468_v10, 16  ;;  %v3835_v4 = vshrl.u32 %v5359_v7, 16 }
  0xe7   : > { %5717 = vmatprep.mubr.msk.bf16.mxu1 %vm687_vm3, %v8229_v45  ;;  %v3838_v27 = vshll.u32 %v5359_v7, 16  ;;  %v3844_v3 = vshll.u32 %v7480_v31, 16  ;;  %v3848_v50 = vshrl.u32 %v7480_v31, 16  ;;  %v7505_v45 = vld [vmem:[%s6428_s27 + $0x74] sm:$0x1]  ;;  %v3792_v18 = vrot.slane %v3790_v48, 5 }
  0xe8   : > { %v3859_v52 = vshrl.u32 %v5362_v62, 16  ;;  %v3862_v53 = vshll.u32 %v5362_v62, 16  ;;  %v8233_v7 = vcombine.low %v7150_v60, %v7175_v44  ;;  %v3802_v59 = vrot.slane %v3800_v8, 4  ;;  %v5365_v48 = vld [vmem:[%s6428_s27 + $0x9c] sm:$0xf] }
  0xe9   : > { %v3868_v63 = vshll.u32 %v7495_v25, 16  ;;  %v3872_v23 = vshrl.u32 %v7495_v25, 16  ;;  %v8234_v62 = vcombine.low %v7190_v17, %v7194_v57  ;;  %v7523_v44 = vld [vmem:[%s6428_s27 + $0x80] sm:$0x1]  ;;  %v3813_v60 = vrot.slane %v3811_v26, 4 }
  0xea   : > { %8235 = vst [vmem:[#allocation16_spill] sm:$0xff] %v7523_v44  ;;  %v3837_v31 = vrot.slane %v3835_v4, 4  ;;  %v3840_v8 = vrot.slane %v3838_v27, 5  ;;  %v7527_v10 = vrot.slane %v3844_v3, 5  ;;  %v3850_v51 = vrot.slane %v3848_v50, 4 }
  0xeb   : > { %v7530_v25 = vld [vmem:[%s6428_s27 + $0xa0] sm:$0xf]  ;;  %v3861_v17 = vrot.slane %v3859_v52, 4  ;;  %v3864_v57 = vrot.slane %v3862_v53, 5  ;;  %v3886_v9 = vshll.u32 %v5365_v48, 16  ;;  %v3793_v26 = vor.u32 %v3792_v18, %v7488_v33 }
  0xec   : > { %v3830_v27 = vshll.u32 %v7523_v44, 16  ;;  %v7542_v3 = vld [vmem:[%s6428_s27 + $0x98] sm:$0x1]  ;;  %v3892_v50 = vshll.u32 %v7530_v25, 16  ;;  %v3896_v52 = vshrl.u32 %v7530_v25, 16  ;;  %v3841_v22 = vor.u32 %v3840_v8, %v3837_v31 }
  0xed   : > { %5870 = vmatmul.mubr.msk.bf16.gmra.mrb[28].mxu0 %vm687_vm3, %v6265_v61  ;;  %v7513_v61 = vrot.slane %v3796_v6, 5  ;;  %v3826_v6 = vrot.slane %v3824_v34, 4  ;;  %v3874_v34 = vrot.slane %v3872_v23, 4  ;;  %v3854_v33 = vshll.u32 %v7533_v2, 16 }
  0xee   : > { %5718 = vmatmul.mubr.msk.bf16.gmra.mrb[12].mxu1 %vm687_vm3, %v8233_v7  ;;  %5875 = vmatprep.mubr.msk.bf16.mxu0 %vm687_vm3, %v7255_v20  ;;  %v3816_v7 = vrot.slane %v3814_v49, 5  ;;  %v7525_v20 = vrot.slane %v3820_v46, 5  ;;  %v3806_v49 = vshll.u32 %v7505_v45, 16  ;;  %v7537_v46 = vrot.slane %v3868_v63, 5 }
  0xef   : > { %5721 = vmatprep.mubr.msk.bf16.mxu1 %vm687_vm3, %v8234_v62  ;;  %v3883_v62 = vshrl.u32 %v5365_v48, 16  ;;  %v3803_v4 = vor.u32 %v3802_v59, %v7513_v61  ;;  %v3851_v23 = vor.u32 %v3850_v51, %v7527_v10  ;;  %v3865_v59 = vor.u32 %v3864_v57, %v3861_v17  ;;  %v7575_v57 = vld [vmem:[%s6428_s27 + $0xa4] sm:$0x1] }
  0xf0   : > { %v3817_v53 = vor.u32 %v3816_v7, %v3813_v60  ;;  %v3827_v48 = vor.u32 %v3826_v6, %v7525_v20  ;;  %v3888_v18 = vrot.slane %v3886_v9, 5  ;;  %v8236_v44 = vcombine.low %v7202_v11, %v7206_v40 }
  0xf1   : > { %v3885_v63 = vrot.slane %v3883_v62, 4  ;;  %v8237_v31 = vrot.slane %v7464_v54, 5  ;;  %v3808_v51 = vrot.slane %v3806_v49, 5  ;;  %v3875_v60 = vor.u32 %v3874_v34, %v7537_v46  ;;  %v7578_v34 = vld [vmem:[%s6428_s27 + $0xac] sm:$0xf] }
  0xf2   : > { %v3878_v9 = vshll.u32 %v7542_v3, 16  ;;  %v8238_v11 = vcombine.low %v7274_v39, %v7278_v55  ;;  %v3794_v40 = vrot.slane %v3793_v26, 4  ;;  %v7571_v54 = vrot.slane %v3892_v50, 5 }
  0xf3   : > { %v3818_v7 = vrot.slane %v3817_v53, 4  ;;  %v3828_v6 = vrot.slane %v3827_v48, 4  ;;  %v3832_v8 = vrot.slane %v3830_v27, 5  ;;  %v3856_v17 = vrot.slane %v3854_v33, 5  ;;  %v7588_v48 = vld [vmem:[%s6428_s27 + $0xb0] sm:$0x1] }
  0xf4   : > { %v3842_v39 = vrot.slane %v3841_v22, 4  ;;  %v3852_v55 = vrot.slane %v3851_v23, 4  ;;  %v3866_v62 = vrot.slane %v3865_v59, 4  ;;  %v3889_v49 = vor.u32 %v3888_v18, %v3885_v63 }
  0xf5   : > { %5876 = vmatmul.mubr.msk.bf16.vlgmr.msra.gmra.mrb[0].mxu0 %vm687_vm3, %v7318_v16  ;;  %v7561_v16 = vsel %vm6680_vm7, %v7486_v28, %v8237_v31  ;;  %v3898_v28 = vrot.slane %v3896_v52, 4  ;;  %v3880_v26 = vrot.slane %v3878_v9, 5  ;;  %v3799_v52 = vsel %vm6454_vm4, %v3794_v40, %v7513_v61 }
  0xf6   : > { %5722 = vmatmul.mubr.msk.bf16.gmra.mrb[16].mxu1 %vm687_vm3, %v8236_v44  ;;  %5908 = vmatpush3.bf16.msra.mxu0 %v7259_v14  ;;  %v3804_v14 = vrot.slane %v3803_v4, 4  ;;  %v5368_v44 = vld [vmem:[%s6428_s27 + $0xa8] sm:$0xf]  ;;  %v3902_v22 = vshll.u32 %v7575_v57, 16  ;;  %v3823_v33 = vsel %vm6454_vm4, %v3818_v7, %v7525_v20  ;;  %v3833_v23 = vsel %vm6454_vm4, %v3828_v6, %v3832_v8 }
  0xf7   : > { %5725 = vmatprep.mubr.msk.bf16.mxu1 %vm687_vm3, %v8238_v11  ;;  %5879 = vmatprep.mubr.msk.bf16.mxu0 %vm687_vm3, %v7329_v29  ;;  %v3876_v29 = vrot.slane %v3875_v60, 4  ;;  %v3907_v4 = vshrl.u32 %v5368_v44, 16  ;;  %v3910_v50 = vshll.u32 %v5368_v44, 16  ;;  %v3899_v53 = vor.u32 %v3898_v28, %v7571_v54  ;;  %v5417_v11 = vld [vmem:[%s6428_s27 + $0x48] sm:$0xe] }
  0xf8   : > { %v3809_v27 = vsel %vm6454_vm4, %v3804_v14, %v3808_v51  ;;  %v3916_v59 = vshll.u32 %v7578_v34, 16  ;;  %v3920_v61 = vshrl.u32 %v7578_v34, 16  ;;  %v3847_v63 = vsel %vm6454_vm4, %v3842_v39, %v7527_v10  ;;  %v7653_v39 = vld [vmem:[%s6428_s27 + $0xb8] sm:$0xf] }
  0xf9   : > { %v3857_v18 = vsel %vm6454_vm4, %v3852_v55, %v3856_v17  ;;  %v3871_v20 = vsel %vm6454_vm4, %v3866_v62, %v7537_v46  ;;  %v3890_v31 = vrot.slane %v3889_v49, 4  ;;  %v8239_v51 = vcombine.low %v7291_v12, %v7306_v35 }
  0xfa   : > { %v3909_v10 = vrot.slane %v3907_v4, 4  ;;  %v3912_v60 = vrot.slane %v3910_v50, 5  ;;  %v3926_v9 = vshll.u32 %v7588_v48, 16  ;;  %v8240_v46 = vcombine.low %v7376_v21, %v7401_v56  ;;  %v5371_v21 = vld [vmem:[%s6428_s27 + $0xb4] sm:$0xf] }
  0xfb   : > { %v5038_v12 = vcombine.low %v7452_v42, %v7459_v47  ;;  %v8241_v35 = vsel %vm6454_vm4, %v7472_v5, %v7461_v41  ;;  %v3900_v14 = vrot.slane %v3899_v53, 4  ;;  %v3904_v28 = vrot.slane %v3902_v22, 5  ;;  %v5419_v4 = vld [vmem:[%s6428_s27 + $0x60] sm:$0xe]  ;;  %v5420_v53 = vld [vmem:[%s6428_s27 + $0x6c] sm:$0xe] }
  0xfc   : > { %v5039_v56 = vcombine.low %v7476_v43, %v7561_v16  ;;  %v7636_v44 = vcombine.low %v3799_v52, %v3809_v27  ;;  %v7638_v42 = vrot.slane %v3916_v59, 5  ;;  %v3922_v47 = vrot.slane %v3920_v61, 4  ;;  %v8250_v16 = vld [vmem:[#allocation4_spill] sm:$0xff] }
  0xfd   : > { %5880 = vmatmul.mubr.msk.bf16.gmra.mrb[4].mxu0 %vm687_vm3, %v7432_v37  ;;  %v3881_v37 = vsel %vm6454_vm4, %v3876_v29, %v3880_v26  ;;  %v7640_v41 = vcombine.low %v3823_v33, %v3833_v23  ;;  %v7642_v5 = vcombine.low %v3847_v63, %v3857_v18  ;;  %v3895_v6 = vsel %vm6454_vm4, %v3890_v31, %v7571_v54  ;;  %v8243_v23 = vld [vmem:[#allocation11_spill] sm:$0xff]  ;;  %v5374_v63 = vld [vmem:[%s6428_s27 + $0xc0] sm:$0xf]  ;;  %v8245_v18 = vld [vmem:[#allocation9_spill] sm:$0xff] }
  0xfe   : > { %5726 = vmatmul.mubr.msk.bf16.gmra.mrb[20].mxu1 %vm687_vm3, %v8239_v51  ;;  %5883 = vmatprep.mubr.msk.bf16.mxu0 %vm687_vm3, %v7446_v58  ;;  %v8242_v58 = vsel %vm6454_vm4, %v7434_v19, %v7389_v1  ;;  %v7644_v7 = vcombine.low %v3871_v20, %v3881_v37  ;;  %v5433_v1 = vrot.slane %v5417_v11, 9  ;;  %v5418_v19 = vld [vmem:[%s6428_s27 + $0x54] sm:$0xe]  ;;  %v3913_v8 = vor.u32 %v3912_v60, %v3909_v10  ;;  %v8246_v31 = vld [vmem:[#allocation10_spill] sm:$0xff] }
  0xff   : > { %5729 = vmatprep.mubr.msk.bf16.mxu1 %vm687_vm3, %v8240_v46  ;;  %v5387_v40 = vcombine.low %v8242_v58, %v8241_v35  ;;  %v7650_v17 = vrot.slane %v3926_v9, 5  ;;  %v3931_v55 = vshrl.u32 %v5371_v21, 16  ;;  %v3905_v62 = vsel %vm6454_vm4, %v3900_v14, %v3904_v28  ;;  %v8247_v9 = vld [vmem:[#allocation12_spill] sm:$0xff]  ;;  %v7702_v35 = vld [vmem:[%s6428_s27 + $0xbc] sm:$0x1] }
 0x100   : > { %v3934_v49 = vshll.u32 %v5371_v21, 16  ;;  %v4390_v29 = vrot.slane %v7284_v0, 5  ;;  %v4393_v26 = vrot.slane %v7338_v38, 5  ;;  %v3923_v50 = vor.u32 %v3922_v47, %v7638_v42  ;;  %v7705_v58 = vld [vmem:[%s6428_s27 + $0xc4] sm:$0xf] }
 0x101   : > { %v5434_v52 = vrot.slane %v5418_v19, 9  ;;  %v4397_v54 = vrot.slane %v7295_v24, 5  ;;  %v4400_v27 = vrot.slane %v7347_v15, 5  ;;  %v3940_v22 = vshll.u32 %v7653_v39, 16  ;;  %v5421_v19 = vld [vmem:[%s6428_s27 + $0x78] sm:$0xe] }
 0x102   : > { %v3944_v33 = vshrl.u32 %v7653_v39, 16  ;;  %v7670_v0 = vsel %vm6680_vm7, %v5433_v1, %v4390_v29  ;;  %v4392_v38 = vrot.slane %v4390_v29, 4  ;;  %v8244_v59 = vcombine.low %v7409_v36, %v8243_v23  ;;  %v8248_v23 = vld [vmem:[#allocation13_spill] sm:$0xff] }
 0x103   : > { %v7677_v24 = vcombine.low %v3895_v6, %v3905_v62  ;;  %v7681_v15 = vsel %vm6680_vm7, %v5434_v52, %v4397_v54  ;;  %v5435_v61 = vrot.slane %v5419_v4, 9  ;;  %v4404_v20 = vrot.slane %v8245_v18, 5  ;;  %v6266_v6 = vld [vmem:[%s6428_s27 + $0xc] sm:$0xff]  }
 0x104   : > { %v7687_v36 = vsel %vm6680_vm7, %v4392_v38, %v4393_v26  ;;  %v4407_v51 = vrot.slane %v8246_v31, 5  ;;  %v5436_v37 = vrot.slane %v5420_v53, 9  ;;  %v4411_v11 = vrot.slane %v8247_v9, 5 }
 0x105   : > { %5884 = vmatmul.mubr.msk.bf16.gmra.mrb[8].mxu0 %vm687_vm3, %v7455_v30  ;;  %v4399_v30 = vrot.slane %v4397_v54, 4  ;;  %v5450_v10 = vcombine.low %v7670_v0, %v7687_v36  ;;  %v4414_v46 = vrot.slane %v7505_v45, 5  ;;  %v7711_v14 = vsel %vm6680_vm7, %v5435_v61, %v4404_v20 }
 0x106   : > { %5730 = vmatmul.mubr.msk.bf16.gmra.mrb[24].mxu1 %vm687_vm3, %v8244_v59  ;;  %5887 = vmatprep.mubr.msk.bf16.mxu0 %vm687_vm3, %v5387_v40  ;;  %v4406_v28 = vrot.slane %v4404_v20, 4  ;;  %v7713_v21 = vrot.slane %v3931_v55, 4  ;;  %v3955_v47 = vshrl.u32 %v5374_v63, 16  ;;  %v7717_v45 = vsel %vm6680_vm7, %v5436_v37, %v4411_v11  ;;  %v5148_v55 = vld [vmem:[%s6428_s27 + $0x78] sm:$0xf]  ;;  %v8249_v59 = vld [vmem:[#allocation16_spill] sm:$0xff] }
 0x107   : > { %5733 = vmatprep.mubr.msk.bf16.mxu1 %vm687_vm3, %v5038_v12  ;;  %v7695_v60 = vsel %vm6680_vm7, %v4399_v30, %v4400_v27  ;;  %v7699_v12 = vrot.slane %v3913_v8, 4  ;;  %v4413_v1 = vrot.slane %v4411_v11, 4  ;;  %v7721_v8 = vrot.slane %v3923_v50, 4 }
 0x108   : > { %v5451_v40 = vcombine.low %v7681_v15, %v7695_v60  ;;  %v7723_v62 = vrot.slane %v3934_v49, 5  ;;  %v3958_v29 = vshll.u32 %v5374_v63, 16  ;;  %v7727_v26 = vsel %vm6680_vm7, %v4406_v28, %v4407_v51  ;;  %v8252_v28 = vld [vmem:[#allocation14_spill] sm:$0xff] }
 0x109   : > { %v7730_v4 = vrot.slane %v3940_v22, 5  ;;  %v7732_v52 = vrot.slane %v3944_v33, 4  ;;  %v5452_v54 = vcombine.low %v7711_v14, %v7727_v26  ;;  %v7738_v27 = vsel %vm6680_vm7, %v4413_v1, %v4414_v46  ;;  %v5422_v33 = vld [vmem:[%s6428_s27 + $0x84] sm:$0xe]  ;;  %v6267_v1 = vld [vmem:[%s6428_s27 + $0x18] sm:$0xff]  }
 0x10a   : > { %v3950_v49 = vshll.u32 %v7702_v35, 16  ;;  %v3964_v50 = vshll.u32 %v7705_v58, 16  ;;  %v5453_v53 = vcombine.low %v7717_v45, %v7738_v27  ;;  %v5437_v22 = vrot.slane %v5421_v19, 9  ;;  %v6329_v60 = vld [vmem:[%s6428_s27 + $0xa0] sm:$0xf] }
 0x10b   : > { %v3957_v38 = vrot.slane %v3955_v47, 4  ;;  %v4421_v30 = vrot.slane %v8249_v59, 5  ;;  %v2277_v61 = vshrl.u32 %v5148_v55, 16  ;;  %v3960_v63 = vrot.slane %v3958_v29, 5  ;;  %v5377_v29 = vld [vmem:[%s6428_s27 + $0xcc] sm:$0xf] }
 0x10c   : > { %v3968_v18 = vshrl.u32 %v7705_v58, 16  ;;  %v2280_v43 = vshll.u32 %v5148_v55, 16  ;;  %v5438_v37 = vrot.slane %v5422_v33, 9  ;;  %v3919_v9 = vsel %vm6454_vm4, %v7699_v12, %v7638_v42  ;;  %v7781_v55 = vld [vmem:[%s6428_s27 + $0xd0] sm:$0xf] }
 0x10d   : > { %5888 = vmatmul.mubr.msk.bf16.gmra.mrb[12].mxu0 %vm687_vm3, %v7636_v44  ;;  %v4418_v44 = vrot.slane %v8248_v23, 5  ;;  %v2279_v51 = vrot.slane %v2277_v61, 4  ;;  %v3937_v11 = vor.u32 %v7723_v62, %v7713_v21  ;;  %v4425_v47 = vrot.slane %v8252_v28, 5  ;;  %v6268_v21 = vld [vmem:[%s6428_s27 + $0x24] sm:$0xff]   ;;  %v6333_v27 = vld [vmem:[%s6428_s27 + $0xac] sm:$0xf] }
 0x10e   : > { %5734 = vmatmul.mubr.msk.bf16.gmra.mrb[28].mxu1 %vm687_vm3, %v5039_v56  ;;  %5891 = vmatprep.mubr.msk.bf16.mxu0 %vm687_vm3, %v7640_v41  ;;  %v8251_v56 = vld [vmem:[#allocation5_spill] sm:$0xff]  ;;  %v2282_v46 = vrot.slane %v2280_v43, 5  ;;  %v3929_v19 = vsel %vm6454_vm4, %v7721_v8, %v7650_v17  ;;  %v4428_v12 = vrot.slane %v7533_v2, 5  ;;  %v7789_v62 = vrot.slane %v3964_v50, 5  ;;  %v5423_v8 = vld [vmem:[%s6428_s27 + $0x90] sm:$0xe] }
 0x10f   : > { %5739 = vmatprep.mubr.msk.bf16.mxu1 %vm687_vm3, %v6266_v6  ;;  %v2299_v41 = vsel %vm6454_vm4, %v8251_v56, %v8250_v16  ;;  %v7763_v20 = vsel %vm6680_vm7, %v5437_v22, %v4418_v44  ;;  %v4420_v31 = vrot.slane %v4418_v44, 4  ;;  %v3947_v6 = vor.u32 %v7732_v52, %v7730_v4  ;;  %v7795_v52 = vld [vmem:[%s6428_s27 + $0xc8] sm:$0x1]  ;;  %v8254_v16 = vld [vmem:[#allocation2_spill] sm:$0xff] }
 0x110   : > { %v3970_v22 = vrot.slane %v3968_v18, 4  ;;  %v2283_v17 = vor.u32 %v2282_v46, %v2279_v51  ;;  %v3952_v23 = vrot.slane %v3950_v49, 5  ;;  %v3961_v44 = vor.u32 %v3960_v63, %v3957_v38  ;;  %v8255_v51 = vld [vmem:[#allocation3_spill] sm:$0xff] }
 0x111   : > { %v7785_v42 = vsel %vm6680_vm7, %v4420_v31, %v4421_v30  ;;  %v7799_v59 = vsel %vm6680_vm7, %v5438_v37, %v4425_v47  ;;  %v4427_v30 = vrot.slane %v4425_v47, 4  ;;  %v3979_v2 = vshrl.u32 %v5377_v29, 16 }
 0x112   : > { %v5454_v33 = vcombine.low %v7763_v20, %v7785_v42  ;;  %v3982_v50 = vshll.u32 %v5377_v29, 16  ;;  %v3988_v61 = vshll.u32 %v7781_v55, 16  ;;  %v2284_v18 = vrot.slane %v2283_v17, 4  ;;  %v6269_v29 = vld [vmem:[%s6428_s27 + $0x30] sm:$0xff]  }
 0x113   : > { %v3992_v49 = vshrl.u32 %v7781_v55, 16  ;;  %v7810_v38 = vsel %vm6680_vm7, %v4427_v30, %v4428_v12  ;;  %v5439_v63 = vrot.slane %v5423_v8, 9  ;;  %v3971_v56 = vor.u32 %v3970_v22, %v7789_v62 }
 0x114   : > { %v3974_v31 = vshll.u32 %v7795_v52, 16  ;;  %v5455_v37 = vcombine.low %v7799_v59, %v7810_v38  ;;  %v5393_v46 = vcombine.low %v3919_v9, %v3929_v19  ;;  %v3938_v28 = vrot.slane %v3937_v11, 4  ;;  %v5424_v11 = vld [vmem:[%s6428_s27 + $0x9c] sm:$0xe] }
 0x115   : > { %5892 = vmatmul.mubr.msk.bf16.gmra.mrb[16].mxu0 %vm687_vm3, %v7642_v5  ;;  %v8253_v5 = vld [vmem:[#allocation15_spill] sm:$0xff]  ;;  %v3948_v47 = vrot.slane %v3947_v6, 4  ;;  %v3962_v12 = vrot.slane %v3961_v44, 4  ;;  %v4435_v8 = vrot.slane %v7542_v3, 5  ;;  %v3981_v30 = vrot.slane %v3979_v2, 4  ;;  %v6270_v19 = vld [vmem:[%s6428_s27 + $0x3c] sm:$0xff]  }
 0x116   : > { %5740 = vmatmul.mubr.msk.bf16.vlgmr.msra.gmra.mrb[0].mxu1 %vm687_vm3, %v6267_v1  ;;  %5895 = vmatprep.mubr.msk.bf16.mxu0 %vm687_vm3, %v7644_v7  ;;  %v4432_v43 = vrot.slane %v8253_v5, 5  ;;  %v2289_v7 = vsel %vm6454_vm4, %v2284_v18, %v8255_v51  ;;  %v3984_v18 = vrot.slane %v3982_v50, 5  ;;  %v7833_v5 = vrot.slane %v3988_v61, 5 }
 0x117   : > { %5942 = vmatpush3.bf16.msra.mxu1 %v8254_v16  ;;  %5743 = vmatprep.mubr.msk.bf16.mxu1 %vm687_vm3, %v6268_v21  ;;  %v7822_v1 = vcombine.low %v2289_v7, %v2299_v41  ;;  %v7826_v21 = vld [vmem:[%s6428_s27 + $0xd4] sm:$0x1]  ;;  %v3994_v9 = vrot.slane %v3992_v49, 4  ;;  %v3972_v41 = vrot.slane %v3971_v56, 4  ;;  %v3976_v6 = vrot.slane %v3974_v31, 5 }
 0x118   : > { %v7830_v22 = vsel %vm6680_vm7, %v5439_v63, %v4432_v43  ;;  %v4434_v17 = vrot.slane %v4432_v43, 4  ;;  %v3943_v63 = vsel %vm6454_vm4, %v3938_v28, %v7730_v4  ;;  %v3953_v2 = vsel %vm6454_vm4, %v3948_v47, %v3952_v23  ;;  %v6320_v16 = vld [vmem:[%s6428_s27 + $0x1c] sm:$0xf]  ;;  %v5425_v28 = vld [vmem:[%s6428_s27 + $0xa8] sm:$0xe] }
 0x119   : > { %v3998_v50 = vshll.u32 %v7826_v21, 16  ;;  %v5440_v61 = vrot.slane %v5424_v11, 9  ;;  %v4439_v49 = vrot.slane %v7530_v25, 5  ;;  %v3967_v4 = vsel %vm6454_vm4, %v3962_v12, %v7789_v62  ;;  %v5413_v62 = vld [vmem:[%s6428_s27 + $0x18] sm:$0xe]  ;;  %v6271_v47 = vld [vmem:[%s6428_s27 + $0x48] sm:$0xff]  }
 0x11a   : > { %v7839_v44 = vsel %vm6680_vm7, %v4434_v17, %v4435_v8  ;;  %v3995_v43 = vor.u32 %v3994_v9, %v7833_v5  ;;  %v4442_v23 = vrot.slane %v7575_v57, 5  ;;  %v3977_v25 = vsel %vm6454_vm4, %v3972_v41, %v3976_v6  ;;  %v6321_v11 = vld [vmem:[%s6428_s27 + $0x20] sm:$0x1] }
 0x11b   : > { %v5456_v3 = vcombine.low %v7830_v22, %v7839_v44  ;;  %v4362_v56 = vrot.slane %v6320_v16, 5  ;;  %v7865_v31 = vsel %vm6680_vm7, %v5440_v61, %v4439_v49  ;;  %v4441_v51 = vrot.slane %v4439_v49, 4  ;;  %v5426_v49 = vld [vmem:[%s6428_s27 + $0xb4] sm:$0xe] }
 0x11c   : > { %v5394_v7 = vcombine.low %v3943_v63, %v3953_v2  ;;  %v3996_v17 = vrot.slane %v3995_v43, 4  ;;  %v5441_v41 = vrot.slane %v5425_v28, 9  ;;  %v4446_v6 = vrot.slane %v7578_v34, 5  ;;  %v5414_v2 = vld [vmem:[%s6428_s27 + $0x24] sm:$0xe] }
 0x11d   : > { %5896 = vmatmul.mubr.msk.bf16.gmra.mrb[20].mxu0 %vm687_vm3, %v7677_v24  ;;  %v3985_v24 = vor.u32 %v3984_v18, %v3981_v30  ;;  %v7870_v57 = vsel %vm6680_vm7, %v4441_v51, %v4442_v23  ;;  %v6272_v30 = vld [vmem:[%s6428_s27 + $0x54] sm:$0xff]   ;;  %v5429_v18 = vrot.slane %v5413_v62, 9  ;;  %v4364_v9 = vrot.slane %v4362_v56, 4  ;;  %v6324_v28 = vld [vmem:[%s6428_s27 + $0x2c] sm:$0x1] }
 0x11e   : > { %5744 = vmatmul.mubr.msk.bf16.gmra.mrb[4].mxu1 %vm687_vm3, %v6269_v29  ;;  %5899 = vmatprep.mubr.msk.bf16.mxu0 %vm687_vm3, %v5393_v46  ;;  %v4000_v46 = vrot.slane %v3998_v50, 5  ;;  %v5395_v29 = vcombine.low %v3967_v4, %v3977_v25  ;;  %v5457_v8 = vcombine.low %v7865_v31, %v7870_v57  ;;  %v4449_v63 = vrot.slane %v7588_v48, 5  ;;  %v6322_v50 = vld [vmem:[%s6428_s27 + $0x28] sm:$0xf]  ;;  %v5415_v25 = vld [vmem:[%s6428_s27 + $0x30] sm:$0xe] }
 0x11f   : > { %5747 = vmatprep.mubr.msk.bf16.mxu1 %vm687_vm3, %v6270_v19  ;;  %v3986_v12 = vrot.slane %v3985_v24, 4  ;;  %v4365_v19 = vrot.slane %v6321_v11, 5  ;;  %v4369_v61 = vrot.slane %v6322_v50, 5  ;;  %v7893_v48 = vsel %vm6680_vm7, %v5441_v41, %v4446_v6  ;;  %v6274_v11 = vld [vmem:[%s6428_s27 + $0x6c] sm:$0xff]   ;;  %v8256_v41 = vld [vmem:[#allocation6_spill] sm:$0xff] }
 0x120   : > { %v4001_v34 = vsel %vm6454_vm4, %v3996_v17, %v4000_v46  ;;  %v4448_v24 = vrot.slane %v4446_v6, 4  ;;  %v4363_v43 = vsel %vm6680_vm7, %v5429_v18, %v4362_v56  ;;  %v5430_v51 = vrot.slane %v5414_v2, 9  ;;  %v5427_v50 = vld [vmem:[%s6428_s27 + $0xc0] sm:$0xe]  ;;  %v6338_v31 = vld [vmem:[%s6428_s27 + $0xc8] sm:$0x1] }
 0x121   : > { %v3991_v4 = vsel %vm6454_vm4, %v3986_v12, %v7833_v5  ;;  %v4366_v23 = vsel %vm6680_vm7, %v4364_v9, %v4365_v19  ;;  %v6323_v5 = vld [vmem:[%s6428_s27 + $0x34] sm:$0xf]  ;;  %v6273_v12 = vld [vmem:[%s6428_s27 + $0x60] sm:$0xff]   ;;  %v5431_v18 = vrot.slane %v5415_v25, 9  ;;  %v4456_v9 = vrot.slane %v7702_v35, 5 }
 0x122   : > { %v4376_v16 = vrot.slane %v6323_v5, 5  ;;  %v7904_v62 = vsel %vm6680_vm7, %v4448_v24, %v4449_v63  ;;  %v5396_v46 = vcombine.low %v3991_v4, %v4001_v34  ;;  %v5446_v17 = vcombine.low %v4363_v43, %v4366_v23  ;;  %v5416_v24 = vld [vmem:[%s6428_s27 + $0x3c] sm:$0xe] }
 0x123   : > { %v5458_v56 = vcombine.low %v7893_v48, %v7904_v62  ;;  %v4379_v6 = vrot.slane %v8256_v41, 5  ;;  %v4370_v35 = vsel %vm6680_vm7, %v5430_v51, %v4369_v61  ;;  %v5443_v5 = vrot.slane %v5427_v50, 9 }
 0x124   : > { %v4378_v19 = vrot.slane %v4376_v16, 4  ;;  %v4377_v23 = vsel %vm6680_vm7, %v5431_v18, %v4376_v16  ;;  %v4463_v51 = vrot.slane %v7795_v52, 5  ;;  %v2440_v57 = vshll.u32 %v6338_v31, 16 }
 0x125   : > { %5900 = vmatmul.mubr.msk.bf16.gmra.mrb[24].mxu0 %vm687_vm3, %v5394_v7  ;;  %v5442_v7 = vrot.slane %v5426_v49, 9 }
 0x126   : > { %5748 = vmatmul.mubr.msk.bf16.gmra.mrb[8].mxu1 %vm687_vm3, %v6271_v47  ;;  %5903 = vmatprep.mubr.msk.bf16.mxu0 %vm687_vm3, %v5395_v29  ;;  %v4372_v47 = vrot.slane %v6324_v28, 5  ;;  %v4453_v29 = vrot.slane %v7653_v39, 5  ;;  %v8257_v39 = vld [vmem:[#allocation7_spill] sm:$0xff]  ;;  %v4380_v25 = vsel %vm6680_vm7, %v4378_v19, %v4379_v6  ;;  %v5432_v28 = vrot.slane %v5416_v24, 9 }
 0x127   : > { %5751 = vmatprep.mubr.msk.bf16.mxu1 %vm687_vm3, %v6272_v30  ;;  %v4371_v30 = vrot.slane %v4369_v61, 4  ;;  %v4383_v49 = vrot.slane %v8257_v39, 5  ;;  %v4460_v61 = vrot.slane %v7705_v58, 5  ;;  %v6325_v39 = vld [vmem:[%s6428_s27 + $0x70] sm:$0xf]  ;;  %v4467_v24 = vrot.slane %v7781_v55, 5 }
 0x128   : > { %v7916_v63 = vsel %vm6680_vm7, %v5442_v7, %v4453_v29  ;;  %v4455_v2 = vrot.slane %v4453_v29, 4  ;;  %v5145_v7 = vld [vmem:[%s6428_s27 + $0x6c] sm:$0xf]  ;;  %v8258_v29 = vld [vmem:[#allocation8_spill] sm:$0xff] }
 0x129   : > { %v4373_v34 = vsel %vm6680_vm7, %v4371_v30, %v4372_v47  ;;  %v4385_v47 = vrot.slane %v4383_v49, 4  ;;  %v6275_v30 = vld [vmem:[%s6428_s27 + $0x78] sm:$0xff]   ;;  %v7947_v16 = vsel %vm6680_vm7, %v5443_v5, %v4460_v61  ;;  %v4462_v18 = vrot.slane %v4460_v61, 4 }
 0x12a   : > { %v7923_v4 = vsel %vm6680_vm7, %v4455_v2, %v4456_v9  ;;  %v5448_v9 = vcombine.low %v4377_v23, %v4380_v25  ;;  %v2253_v19 = vshrl.u32 %v5145_v7, 16  ;;  %v2256_v41 = vshll.u32 %v5145_v7, 16 }
 0x12b   : > { %v5459_v43 = vcombine.low %v7916_v63, %v7923_v4  ;;  %v7952_v58 = vsel %vm6680_vm7, %v4462_v18, %v4463_v51  ;;  %v4384_v6 = vsel %vm6680_vm7, %v5432_v28, %v4383_v49  ;;  %v4470_v49 = vrot.slane %v7826_v21, 5  ;;  %v6277_v51 = vld [vmem:[%s6428_s27 + $0x90] sm:$0xff]   ;;  %v6278_v21 = vld [vmem:[%s6428_s27 + $0x9c] sm:$0xff]  }
 0x12c   : > { %v5460_v50 = vcombine.low %v7947_v16, %v7952_v58  ;;  %v2255_v23 = vrot.slane %v2253_v19, 4  ;;  %v2258_v25 = vrot.slane %v2256_v41, 5  ;;  %v4469_v7 = vrot.slane %v4467_v24, 4 }
 0x12d   : > { %5904 = vmatmul.mubr.msk.bf16.gmra.mrb[28].mxu0 %vm687_vm3, %v5396_v46  ;;  %v5447_v46 = vcombine.low %v4370_v35, %v4373_v34  ;;  %v2262_v35 = vshll.u32 %v6325_v39, 16  ;;  %v2266_v34 = vshrl.u32 %v6325_v39, 16 }
 0x12e   : > { %5752 = vmatmul.mubr.msk.bf16.gmra.mrb[12].mxu1 %vm687_vm3, %v6273_v12  ;;  %5909 = vmatprep.mubr.msk.bf16.mxu0 %vm687_vm3, %v5446_v17  ;;  %v4386_v12 = vrot.slane %v8258_v29, 5  ;;  %v5428_v17 = vld [vmem:[%s6428_s27 + $0xcc] sm:$0xe]  ;;  %v7974_v55 = vsel %vm6680_vm7, %v4469_v7, %v4470_v49 }
 0x12f   : > { %5755 = vmatprep.mubr.msk.bf16.mxu1 %vm687_vm3, %v6274_v11  ;;  %v6276_v11 = vld [vmem:[%s6428_s27 + $0x84] sm:$0xff]   ;;  %v5444_v52 = vrot.slane %v5428_v17, 9  ;;  %v2268_v28 = vrot.slane %v2266_v34, 4  ;;  %v6326_v17 = vld [vmem:[%s6428_s27 + $0x74] sm:$0x1] }
 0x130   : > { %v4387_v2 = vsel %vm6680_vm7, %v4385_v47, %v4386_v12  ;;  %v5151_v47 = vld [vmem:[%s6428_s27 + $0x84] sm:$0xf]  ;;  %v2259_v12 = vor.u32 %v2258_v25, %v2255_v23  ;;  %v6280_v34 = vld [vmem:[%s6428_s27 + $0xb4] sm:$0xff]  }
 0x131   : > { %v7969_v5 = vsel %vm6680_vm7, %v5444_v52, %v4467_v24  ;;  %v5449_v61 = vcombine.low %v4384_v6, %v4387_v2  ;;  %v2304_v18 = vshll.u32 %v5151_v47, 16  ;;  %v5154_v6 = vld [vmem:[%s6428_s27 + $0x90] sm:$0xf]  ;;  %v6279_v2 = vld [vmem:[%s6428_s27 + $0xa8] sm:$0xff]  }
 0x132   : > { %v5461_v29 = vcombine.low %v7969_v5, %v7974_v55  ;;  %v2260_v52 = vrot.slane %v2259_v12, 4  ;;  %v2325_v23 = vshrl.u32 %v5154_v6, 16  ;;  %v2328_v25 = vshll.u32 %v5154_v6, 16 }
 0x133   : > { %v2358_v12 = vshll.u32 %v6329_v60, 16 }
 0x134   : > { %v2330_v14 = vrot.slane %v2328_v25, 5  ;;  %v6332_v25 = vld [vmem:[%s6428_s27 + $0xa4] sm:$0x1] }
 0x135   : > { %5910 = vmatmul.mubr.msk.bf16.vlgmr.msra.gmra.mrb[0].mxu0 %vm687_vm3, %v5447_v46  ;;  %v2264_v46 = vrot.slane %v2262_v35, 5  ;;  %v5157_v35 = vld [vmem:[%s6428_s27 + $0x9c] sm:$0xf]  ;;  %v8016_v6 = vrot.slane %v2358_v12, 5 }
 0x136   : > { %5756 = vmatmul.mubr.msk.bf16.gmra.mrb[16].mxu1 %vm687_vm3, %v6275_v30  ;;  %5913 = vmatprep.mubr.msk.bf16.mxu0 %vm687_vm3, %v5448_v9  ;;  %v2272_v30 = vshll.u32 %v6326_v17, 16  ;;  %v2301_v9 = vshrl.u32 %v5151_v47, 16  ;;  %v2352_v47 = vshll.u32 %v5157_v35, 16  ;;  %v6330_v17 = vld [vmem:[%s6428_s27 + $0x8c] sm:$0x1] }
 0x137   : > { %5759 = vmatprep.mubr.msk.bf16.mxu1 %vm687_vm3, %v6276_v11  ;;  %v2269_v13 = vor.u32 %v2268_v28, %v2264_v46  ;;  %v6327_v11 = vld [vmem:[%s6428_s27 + $0x88] sm:$0xf]  ;;  %v2265_v7 = vsel %vm6454_vm4, %v2260_v52, %v2264_v46 }
 0x138   : > { %v2310_v19 = vshll.u32 %v6327_v11, 16  ;;  %v2314_v41 = vshrl.u32 %v6327_v11, 16  ;;  %v2274_v0 = vrot.slane %v2272_v30, 5  ;;  %v2303_v36 = vrot.slane %v2301_v9, 4 }
 0x139   : > { %v2270_v39 = vrot.slane %v2269_v13, 4  ;;  %v2320_v30 = vshll.u32 %v6330_v17, 16  ;;  %v2327_v9 = vrot.slane %v2325_v23, 4  ;;  %v2354_v11 = vrot.slane %v2352_v47, 5 }
 0x13a   : > { %v7993_v24 = vrot.slane %v2310_v19, 5  ;;  %v2316_v49 = vrot.slane %v2314_v41, 4  ;;  %v6281_v19 = vld [vmem:[%s6428_s27 + $0xc0] sm:$0xff]  }
 0x13b   : > { %v2275_v46 = vsel %vm6454_vm4, %v2270_v39, %v2274_v0  ;;  %v5160_v39 = vld [vmem:[%s6428_s27 + $0xa8] sm:$0xf] }
 0x13c   : > { %v2317_v13 = vor.u32 %v2316_v49, %v7993_v24  ;;  %v5178_v41 = vcombine.low %v2265_v7, %v2275_v46  ;;  %v2368_v7 = vshll.u32 %v6332_v25, 16  ;;  %v2376_v45 = vshll.u32 %v5160_v39, 16 }
 0x13d   : > { %5914 = vmatmul.mubr.msk.bf16.gmra.mrb[4].mxu0 %vm687_vm3, %v5449_v61  ;;  %v6328_v61 = vld [vmem:[%s6428_s27 + $0x94] sm:$0xf] }
 0x13e   : > { %5760 = vmatmul.mubr.msk.bf16.gmra.mrb[20].mxu1 %vm687_vm3, %v6277_v51  ;;  %5917 = vmatprep.mubr.msk.bf16.mxu0 %vm687_vm3, %v5450_v10  ;;  %v2306_v10 = vrot.slane %v2304_v18, 5  ;;  %v2334_v51 = vshll.u32 %v6328_v61, 16  ;;  %v2338_v28 = vshrl.u32 %v6328_v61, 16  ;;  %v2318_v0 = vrot.slane %v2317_v13, 4 }
 0x13f   : > { %5763 = vmatprep.mubr.msk.bf16.mxu1 %vm687_vm3, %v6278_v21  ;;  %v2349_v21 = vshrl.u32 %v5157_v35, 16  ;;  %v6331_v35 = vld [vmem:[%s6428_s27 + $0x98] sm:$0x1]  ;;  %v2373_v61 = vshrl.u32 %v5160_v39, 16  ;;  %v5166_v39 = vld [vmem:[%s6428_s27 + $0xc0] sm:$0xf] }
 0x140   : > { %v2307_v15 = vor.u32 %v2306_v10, %v2303_v36  ;;  %v8013_v26 = vrot.slane %v2334_v51, 5  ;;  %v2322_v36 = vrot.slane %v2320_v30, 5  ;;  %v2331_v10 = vor.u32 %v2330_v14, %v2327_v9  ;;  %v5163_v51 = vld [vmem:[%s6428_s27 + $0xb4] sm:$0xf] }
 0x141   : > { %v2351_v18 = vrot.slane %v2349_v21, 4  ;;  %v2386_v21 = vshrl.u32 %v6333_v27, 16  ;;  %v2397_v20 = vshrl.u32 %v5163_v51, 16  ;;  %v2400_v42 = vshll.u32 %v5163_v51, 16 }
 0x142   : > { %v2308_v52 = vrot.slane %v2307_v15, 4  ;;  %v2323_v46 = vsel %vm6454_vm4, %v2318_v0, %v2322_v36  ;;  %v2332_v15 = vrot.slane %v2331_v10, 4  ;;  %v2370_v30 = vrot.slane %v2368_v7, 5 }
 0x143   : > { %v2355_v23 = vor.u32 %v2354_v11, %v2351_v18  ;;  %v2375_v9 = vrot.slane %v2373_v61, 4  ;;  %v2388_v11 = vrot.slane %v2386_v21, 4  ;;  %v6337_v61 = vld [vmem:[%s6428_s27 + $0xbc] sm:$0x1] }
 0x144   : > { %v2313_v47 = vsel %vm6454_vm4, %v2308_v52, %v7993_v24  ;;  %v2337_v0 = vsel %vm6454_vm4, %v2332_v15, %v8013_v26  ;;  %v2416_v22 = vshll.u32 %v6337_v61, 16 }
 0x145   : > { %5918 = vmatmul.mubr.msk.bf16.gmra.mrb[8].mxu0 %vm687_vm3, %v5451_v40  ;;  %v2362_v40 = vshrl.u32 %v6329_v60, 16  ;;  %v2356_v17 = vrot.slane %v2355_v23, 4  ;;  %v5180_v24 = vcombine.low %v2313_v47, %v2323_v46 }
 0x146   : > { %5764 = vmatmul.mubr.msk.bf16.gmra.mrb[24].mxu1 %vm687_vm3, %v6279_v2  ;;  %5921 = vmatprep.mubr.msk.bf16.mxu0 %vm687_vm3, %v5452_v54  ;;  %v2340_v54 = vrot.slane %v2338_v28, 4 }
 0x147   : > { %5767 = vmatprep.mubr.msk.bf16.mxu1 %vm687_vm3, %v6280_v34  ;;  %v2364_v2 = vrot.slane %v2362_v40, 4  ;;  %v2344_v34 = vshll.u32 %v6331_v35, 16  ;;  %v2361_v10 = vsel %vm6454_vm4, %v2356_v17, %v8016_v6  ;;  %v2442_v17 = vrot.slane %v2440_v57, 5 }
 0x148   : > { %v2341_v49 = vor.u32 %v2340_v54, %v8013_v26  ;;  %v2378_v54 = vrot.slane %v2376_v45, 5  ;;  %v6335_v26 = vld [vmem:[%s6428_s27 + $0xb0] sm:$0x1] }
 0x149   : > { %v2365_v28 = vor.u32 %v2364_v2, %v8016_v6  ;;  %v2346_v60 = vrot.slane %v2344_v34, 5  ;;  %v2392_v35 = vshll.u32 %v6335_v26, 16  ;;  %v2421_v34 = vshrl.u32 %v5166_v39, 16 }
 0x14a   : > { %v2342_v13 = vrot.slane %v2341_v49, 4  ;;  %v2379_v38 = vor.u32 %v2378_v54, %v2375_v9  ;;  %v2424_v6 = vshll.u32 %v5166_v39, 16  ;;  %v6336_v49 = vld [vmem:[%s6428_s27 + $0xc4] sm:$0xf] }
 0x14b   : > { %v2366_v14 = vrot.slane %v2365_v28, 4  ;;  %v2430_v23 = vshll.u32 %v6336_v49, 16  ;;  %v2434_v25 = vshrl.u32 %v6336_v49, 16  ;;  %v2394_v45 = vrot.slane %v2392_v35, 5 }
 0x14c   : > { %v2347_v36 = vsel %vm6454_vm4, %v2342_v13, %v2346_v60  ;;  %v2380_v51 = vrot.slane %v2379_v38, 4  ;;  %v2418_v60 = vrot.slane %v2416_v22, 5 }
 0x14d   : > { %5922 = vmatmul.mubr.msk.bf16.gmra.mrb[12].mxu0 %vm687_vm3, %v5453_v53  ;;  %v2382_v53 = vshll.u32 %v6333_v27, 16  ;;  %v2371_v59 = vsel %vm6454_vm4, %v2366_v14, %v2370_v30  ;;  %v5181_v44 = vcombine.low %v2337_v0, %v2347_v36  ;;  %v2423_v27 = vrot.slane %v2421_v34, 4 }
 0x14e   : > { %5768 = vmatmul.mubr.msk.bf16.gmra.mrb[28].mxu1 %vm687_vm3, %v6281_v19  ;;  %5925 = vmatprep.mubr.msk.bf16.mxu0 %vm687_vm3, %v5454_v33  ;;  %v6334_v33 = vld [vmem:[%s6428_s27 + $0xb8] sm:$0xf]  ;;  %v2399_v19 = vrot.slane %v2397_v20, 4  ;;  %v2432_v21 = vrot.slane %v2430_v23, 5  ;;  %v2436_v47 = vrot.slane %v2434_v25, 4 }
 0x14f   : > { %5789 = vmatprep.mubr.msk.bf16.mxu1 %vm687_vm3, %v5178_v41  ;;  %v2406_v12 = vshll.u32 %v6334_v33, 16  ;;  %v2410_v40 = vshrl.u32 %v6334_v33, 16  ;;  %v2384_v18 = vrot.slane %v2382_v53, 5  ;;  %v2402_v41 = vrot.slane %v2400_v42, 5 }
 0x150   : > { %v2426_v53 = vrot.slane %v2424_v6, 5 }
 0x151   : > { %v2408_v52 = vrot.slane %v2406_v12, 5  ;;  %v2412_v2 = vrot.slane %v2410_v40, 4  ;;  %v2385_v20 = vsel %vm6454_vm4, %v2380_v51, %v2384_v18  ;;  %v2437_v12 = vor.u32 %v2436_v47, %v2432_v21 }
 0x152   : > { %v2427_v33 = vor.u32 %v2426_v53, %v2423_v27 }
 0x153   : > { %v2413_v7 = vor.u32 %v2412_v2, %v2408_v52  ;;  %v2438_v13 = vrot.slane %v2437_v12, 4  ;;  %v8108_v2 = vld [vmem:[%s8190_s2] ss:$0 sm:$0xff] }
 0x154   : > { %v2428_v40 = vrot.slane %v2427_v33, 4 }
 0x155   : > { %5926 = vmatmul.mubr.msk.bf16.gmra.mrb[16].mxu0 %vm687_vm3, %v5455_v37  ;;  %v2389_v37 = vor.u32 %v2388_v11, %v2384_v18  ;;  %v2414_v15 = vrot.slane %v2413_v7, 4  ;;  %v2443_v9 = vsel %vm6454_vm4, %v2438_v13, %v2442_v17 }
 0x156   : > { %5790 = vmatmul.mubr.msk.bf16.vlgmr.msra.gmra.mrb[16].mxu1 %vm687_vm3, %v7822_v1  ;;  %5929 = vmatprep.mubr.msk.bf16.mxu0 %vm687_vm3, %v5456_v3  ;;  %v2403_v1 = vor.u32 %v2402_v41, %v2399_v19  ;;  %v5182_v3 = vcombine.low %v2361_v10, %v2371_v59  ;;  %v2433_v30 = vsel %vm6454_vm4, %v2428_v40, %v2432_v21 }
 0x157   : > { %5793 = vmatprep.mubr.msk.bf16.mxu1 %vm687_vm3, %v5180_v24  ;;  %v2390_v28 = vrot.slane %v2389_v37, 4  ;;  %v2419_v48 = vsel %vm6454_vm4, %v2414_v15, %v2418_v60  ;;  %v5185_v14 = vcombine.low %v2433_v30, %v2443_v9 }
 0x158   : > { %v2404_v46 = vrot.slane %v2403_v1, 4 }
 0x159   : > { %v2395_v42 = vsel %vm6454_vm4, %v2390_v28, %v2394_v45 }
 0x15a   : > { %v5183_v62 = vcombine.low %v2385_v20, %v2395_v42 }
 0x15d   : > { %5930 = vmatmul.mubr.msk.bf16.gmra.mrb[20].mxu0 %vm687_vm3, %v5457_v8  ;;  %v2409_v8 = vsel %vm6454_vm4, %v2404_v46, %v2408_v52 }
 0x15e   : > { %5794 = vmatmul.mubr.msk.bf16.gmra.mrb[20].mxu1 %vm687_vm3, %v5181_v44  ;;  %5933 = vmatprep.mubr.msk.bf16.mxu0 %vm687_vm3, %v5458_v56  ;;  %v5184_v56 = vcombine.low %v2409_v8, %v2419_v48 }
 0x15f   : > { %5797 = vmatprep.mubr.msk.bf16.mxu1 %vm687_vm3, %v5182_v3 }
 0x165   : > { %5934 = vmatmul.mubr.msk.bf16.gmra.mrb[24].mxu0 %vm687_vm3, %v5459_v43 }
 0x166   : > { %5798 = vmatmul.mubr.msk.bf16.gmra.mrb[24].mxu1 %vm687_vm3, %v5183_v62  ;;  %5937 = vmatprep.mubr.msk.bf16.mxu0 %vm687_vm3, %v5460_v50 }
 0x167   : > { %5801 = vmatprep.mubr.msk.bf16.mxu1 %vm687_vm3, %v5184_v56 }
 0x16d   : > { %5938 = vmatmul.mubr.msk.bf16.gmra.mrb[28].mxu0 %vm687_vm3, %v5461_v29 }
 0x16e   : > { %5802 = vmatmul.mubr.msk.bf16.gmra.mrb[28].mxu1 %vm687_vm3, %v5185_v14 }
 0x1e9   : > { %v5741_v63 = vpop.f32.mrb[0].mxu1 }
 0x1ea   : > { %v1853_v4 = vpop.f32.mrb[1].mxu1 }
 0x1eb   : > { %v5742_v43 = vpop.f32.mrb[2].mxu1 }
 0x1ec   : > { %v1856_v16 = vpop.f32.mrb[3].mxu1 }
 0x1f1   : > { %v5745_v58 = vpop.f32.mrb[4].mxu1 }
 0x1f2   : > { %v1869_v50 = vpop.f32.mrb[5].mxu1 }
 0x1f3   : > { %v5746_v54 = vpop.f32.mrb[6].mxu1 }
 0x1f4   : > { %v1872_v18 = vpop.f32.mrb[7].mxu1 }
 0x1f9   : > { %v5749_v11 = vpop.f32.mrb[8].mxu1 }
 0x1fa   : > { %v1885_v32 = vpop.f32.mrb[9].mxu1 }
 0x1fb   : > { %v5750_v24 = vpop.f32.mrb[10].mxu1 }
 0x1fc   : > { %v1888_v19 = vpop.f32.mrb[11].mxu1 }
 0x201   : > { %v5753_v41 = vpop.f32.mrb[12].mxu1 }
 0x202   : > { %v1901_v52 = vpop.f32.mrb[13].mxu1 }
 0x203   : > { %v5754_v5 = vpop.f32.mrb[14].mxu1 }
 0x204   : > { %v1904_v55 = vpop.f32.mrb[15].mxu1 }
 0x208   : > { %v5911_v29 = vpop.f32.mrb[0].mxu0 }
 0x209   : > { %v5943_v39 = vadd.f32 %v5911_v29, %v5741_v63  ;;  %v4607_v0 = vpop.f32.mrb[1].mxu0 }
 0x20a   : > { %v5944_v36 = vadd.f32 %v4607_v0, %v1853_v4  ;;  %v5912_v10 = vpop.f32.mrb[2].mxu0 }
 0x20b   : > { %v4775_v59 = vadd.f32 %v5943_v39, %v8108_v2  ;;  %v5945_v38 = vadd.f32 %v5912_v10, %v5742_v43  ;;  %v4610_v37 = vpop.f32.mrb[3].mxu0 }
 0x20c   : > { %v4773_v26 = vadd.f32 %v5944_v36, %v8108_v2  ;;  %v5946_v35 = vadd.f32 %v4610_v37, %v1856_v16 }
 0x20d   : > { %4807 = vst [vmem:[%s8113_s24 + $0x10] sm:$0xff] %v4775_v59  ;;  %v4776_v34 = vadd.f32 %v5945_v38, %v8108_v2 }
 0x20e   : > { %4805 = vst [vmem:[%s8113_s24] sm:$0xff] %v4773_v26  ;;  %v4774_v6 = vadd.f32 %v5946_v35, %v8108_v2 }
 0x20f   : > { %4808 = vst [vmem:[%s8113_s24 + $0x18] sm:$0xff] %v4776_v34 }
 0x210   : > { %4806 = vst [vmem:[%s8113_s24 + $0x8] sm:$0xff] %v4774_v6  ;;  %v5915_v49 = vpop.f32.mrb[4].mxu0 }
 0x211   : > { %v5947_v23 = vadd.f32 %v5915_v49, %v5745_v58  ;;  %v4623_v25 = vpop.f32.mrb[5].mxu0 }
 0x212   : > { %v5948_v1 = vadd.f32 %v4623_v25, %v1869_v50  ;;  %v5916_v7 = vpop.f32.mrb[6].mxu0 }
 0x213   : > { %v4779_v61 = vadd.f32 %v5947_v23, %v8108_v2  ;;  %v5949_v22 = vadd.f32 %v5916_v7, %v5746_v54  ;;  %v4626_v44 = vpop.f32.mrb[7].mxu0 }
 0x214   : > { %v4777_v3 = vadd.f32 %v5948_v1, %v8108_v2  ;;  %v5950_v51 = vadd.f32 %v4626_v44, %v1872_v18 }
 0x215   : > { %4811 = vst [vmem:[%s8113_s24 + $0x30] sm:$0xff] %v4779_v61  ;;  %v4780_v28 = vadd.f32 %v5949_v22, %v8108_v2 }
 0x216   : > { %4809 = vst [vmem:[%s8113_s24 + $0x20] sm:$0xff] %v4777_v3  ;;  %v4778_v45 = vadd.f32 %v5950_v51, %v8108_v2 }
 0x217   : > { %4812 = vst [vmem:[%s8113_s24 + $0x38] sm:$0xff] %v4780_v28 }
 0x218   : > { %4810 = vst [vmem:[%s8113_s24 + $0x28] sm:$0xff] %v4778_v45  ;;  %v5919_v27 = vpop.f32.mrb[8].mxu0 }
 0x219   : > { %v5951_v53 = vadd.f32 %v5919_v27, %v5749_v11  ;;  %v4639_v21 = vpop.f32.mrb[9].mxu0 }
 0x21a   : > { %v5952_v47 = vadd.f32 %v4639_v21, %v1885_v32  ;;  %v5920_v46 = vpop.f32.mrb[10].mxu0 }
 0x21b   : > { %v4783_v15 = vadd.f32 %v5951_v53, %v8108_v2  ;;  %v5953_v60 = vadd.f32 %v5920_v46, %v5750_v24  ;;  %v4642_v20 = vpop.f32.mrb[11].mxu0 }
 0x21c   : > { %v4781_v42 = vadd.f32 %v5952_v47, %v8108_v2  ;;  %v5954_v33 = vadd.f32 %v4642_v20, %v1888_v19 }
 0x21d   : > { %4815 = vst [vmem:[%s8113_s24 + $0x50] sm:$0xff] %v4783_v15  ;;  %v4784_v12 = vadd.f32 %v5953_v60, %v8108_v2 }
 0x21e   : > { %4813 = vst [vmem:[%s8113_s24 + $0x40] sm:$0xff] %v4781_v42  ;;  %v4782_v31 = vadd.f32 %v5954_v33, %v8108_v2 }
 0x21f   : > { %4816 = vst [vmem:[%s8113_s24 + $0x58] sm:$0xff] %v4784_v12 }
 0x220   : > { %4814 = vst [vmem:[%s8113_s24 + $0x48] sm:$0xff] %v4782_v31  ;;  %v5923_v57 = vpop.f32.mrb[12].mxu0 }
 0x221   : > { %v5955_v8 = vadd.f32 %v5923_v57, %v5753_v41  ;;  %v4655_v48 = vpop.f32.mrb[13].mxu0 }
 0x222   : > { %v5956_v62 = vadd.f32 %v4655_v48, %v1901_v52  ;;  %v5924_v56 = vpop.f32.mrb[14].mxu0 }
 0x223   : > { %v4787_v40 = vadd.f32 %v5955_v8, %v8108_v2  ;;  %v5957_v13 = vadd.f32 %v5924_v56, %v5754_v5  ;;  %v4658_v17 = vpop.f32.mrb[15].mxu0 }
 0x224   : > { %v4785_v30 = vadd.f32 %v5956_v62, %v8108_v2  ;;  %v5958_v9 = vadd.f32 %v4658_v17, %v1904_v55 }
 0x225   : > { %4819 = vst [vmem:[%s8113_s24 + $0x70] sm:$0xff] %v4787_v40  ;;  %v4788_v14 = vadd.f32 %v5957_v13, %v8108_v2 }
 0x226   : > { %4817 = vst [vmem:[%s8113_s24 + $0x60] sm:$0xff] %v4785_v30  ;;  %v4786_v63 = vadd.f32 %v5958_v9, %v8108_v2 }
 0x227   : > { %4820 = vst [vmem:[%s8113_s24 + $0x78] sm:$0xff] %v4788_v14 }
 0x228   : > { %4818 = vst [vmem:[%s8113_s24 + $0x68] sm:$0xff] %v4786_v63  ;;  %v5927_v4 = vpop.f32.mrb[16].mxu0 }
 0x229   : > { %v5791_v43 = vpop.f32.mrb[16].mxu1  ;;  %v4671_v16 = vpop.f32.mrb[17].mxu0 }
 0x22a   : > { %v5959_v58 = vadd.f32 %v5927_v4, %v5791_v43  ;;  %v2643_v50 = vpop.f32.mrb[17].mxu1  ;;  %v5928_v54 = vpop.f32.mrb[18].mxu0 }
 0x22b   : > { %v5960_v18 = vadd.f32 %v4671_v16, %v2643_v50  ;;  %v5792_v11 = vpop.f32.mrb[18].mxu1  ;;  %v4674_v32 = vpop.f32.mrb[19].mxu0 }
 0x22c   : > { %v4791_v24 = vadd.f32 %v5959_v58, %v8108_v2  ;;  %v5961_v19 = vadd.f32 %v5928_v54, %v5792_v11  ;;  %v2646_v41 = vpop.f32.mrb[19].mxu1 }
 0x22d   : > { %v4789_v52 = vadd.f32 %v5960_v18, %v8108_v2  ;;  %v5962_v5 = vadd.f32 %v4674_v32, %v2646_v41 }
 0x22e   : > { %4823 = vst [vmem:[%s8113_s24 + $0x90] sm:$0xff] %v4791_v24  ;;  %v4792_v55 = vadd.f32 %v5961_v19, %v8108_v2 }
 0x22f   : > { %4821 = vst [vmem:[%s8113_s24 + $0x80] sm:$0xff] %v4789_v52  ;;  %v4790_v29 = vadd.f32 %v5962_v5, %v8108_v2 }
 0x230   : > { %4824 = vst [vmem:[%s8113_s24 + $0x98] sm:$0xff] %v4792_v55  ;;  %v5931_v39 = vpop.f32.mrb[20].mxu0 }
 0x231   : > { %4822 = vst [vmem:[%s8113_s24 + $0x88] sm:$0xff] %v4790_v29  ;;  %v5795_v0 = vpop.f32.mrb[20].mxu1  ;;  %v4687_v36 = vpop.f32.mrb[21].mxu0 }
 0x232   : > { %v5963_v10 = vadd.f32 %v5931_v39, %v5795_v0  ;;  %v2659_v59 = vpop.f32.mrb[21].mxu1  ;;  %v5932_v38 = vpop.f32.mrb[22].mxu0 }
 0x233   : > { %v5964_v37 = vadd.f32 %v4687_v36, %v2659_v59  ;;  %v5796_v26 = vpop.f32.mrb[22].mxu1  ;;  %v4690_v35 = vpop.f32.mrb[23].mxu0 }
 0x234   : > { %v4795_v34 = vadd.f32 %v5963_v10, %v8108_v2  ;;  %v5965_v6 = vadd.f32 %v5932_v38, %v5796_v26  ;;  %v2662_v49 = vpop.f32.mrb[23].mxu1 }
 0x235   : > { %v4793_v23 = vadd.f32 %v5964_v37, %v8108_v2  ;;  %v5966_v25 = vadd.f32 %v4690_v35, %v2662_v49 }
 0x236   : > { %4827 = vst [vmem:[%s8113_s24 + $0xb0] sm:$0xff] %v4795_v34  ;;  %v4796_v1 = vadd.f32 %v5965_v6, %v8108_v2 }
 0x237   : > { %4825 = vst [vmem:[%s8113_s24 + $0xa0] sm:$0xff] %v4793_v23  ;;  %v4794_v7 = vadd.f32 %v5966_v25, %v8108_v2 }
 0x238   : > { %4828 = vst [vmem:[%s8113_s24 + $0xb8] sm:$0xff] %v4796_v1  ;;  %v5935_v61 = vpop.f32.mrb[24].mxu0 }
 0x239   : > { %4826 = vst [vmem:[%s8113_s24 + $0xa8] sm:$0xff] %v4794_v7  ;;  %v5799_v22 = vpop.f32.mrb[24].mxu1  ;;  %v4703_v44 = vpop.f32.mrb[25].mxu0 }
 0x23a   : > { %v5967_v3 = vadd.f32 %v5935_v61, %v5799_v22  ;;  %v2675_v51 = vpop.f32.mrb[25].mxu1  ;;  %v5936_v28 = vpop.f32.mrb[26].mxu0 }
 0x23b   : > { %v5968_v45 = vadd.f32 %v4703_v44, %v2675_v51  ;;  %v5800_v27 = vpop.f32.mrb[26].mxu1  ;;  %v4706_v53 = vpop.f32.mrb[27].mxu0 }
 0x23c   : > { %v4799_v21 = vadd.f32 %v5967_v3, %v8108_v2  ;;  %v5969_v47 = vadd.f32 %v5936_v28, %v5800_v27  ;;  %v2678_v46 = vpop.f32.mrb[27].mxu1 }
 0x23d   : > { %v4797_v15 = vadd.f32 %v5968_v45, %v8108_v2  ;;  %v5970_v60 = vadd.f32 %v4706_v53, %v2678_v46 }
 0x23e   : > { %4831 = vst [vmem:[%s8113_s24 + $0xd0] sm:$0xff] %v4799_v21  ;;  %v4800_v20 = vadd.f32 %v5969_v47, %v8108_v2 }
 0x23f   : > { %4829 = vst [vmem:[%s8113_s24 + $0xc0] sm:$0xff] %v4797_v15  ;;  %v4798_v42 = vadd.f32 %v5970_v60, %v8108_v2 }
 0x240   : > { %4832 = vst [vmem:[%s8113_s24 + $0xd8] sm:$0xff] %v4800_v20  ;;  %v5939_v33 = vpop.f32.mrb[28].mxu0 }
 0x241   : > { %4830 = vst [vmem:[%s8113_s24 + $0xc8] sm:$0xff] %v4798_v42  ;;  %v5803_v12 = vpop.f32.mrb[28].mxu1  ;;  %v4719_v31 = vpop.f32.mrb[29].mxu0 }
 0x242   : > { %v5971_v57 = vadd.f32 %v5939_v33, %v5803_v12  ;;  %v2691_v8 = vpop.f32.mrb[29].mxu1  ;;  %v5940_v48 = vpop.f32.mrb[30].mxu0 }
 0x243   : > { %v5972_v62 = vadd.f32 %v4719_v31, %v2691_v8  ;;  %v5804_v56 = vpop.f32.mrb[30].mxu1  ;;  %v4722_v40 = vpop.f32.mrb[31].mxu0 }
 0x244   : > { %v4803_v13 = vadd.f32 %v5971_v57, %v8108_v2  ;;  %v5973_v17 = vadd.f32 %v5940_v48, %v5804_v56  ;;  %v2694_v30 = vpop.f32.mrb[31].mxu1 }
 0x245   : > { %v4801_v9 = vadd.f32 %v5972_v62, %v8108_v2  ;;  %v5974_v14 = vadd.f32 %v4722_v40, %v2694_v30 }
 0x246   : > { %4835 = vst [vmem:[%s8113_s24 + $0xf0] sm:$0xff] %v4803_v13  ;;  %v4804_v63 = vadd.f32 %v5973_v17, %v8108_v2 }
 0x247   : > { %4833 = vst [vmem:[%s8113_s24 + $0xe0] sm:$0xff] %v4801_v9  ;;  %v4802_v4 = vadd.f32 %v5974_v14, %v8108_v2 }
 0x248   : > { %4836 = vst [vmem:[%s8113_s24 + $0xf8] sm:$0xff] %v4804_v63 }
 0x249   : > { %4834 = vst [vmem:[%s8113_s24 + $0xe8] sm:$0xff] %v4802_v4 }
 0x24a PF: > { %s13_s14 = sadd.s32 1, %s6361_s14   ;;  %s8259_s12 = smov %s6357_s13 }
 0x24b   : > { %p10_p5 = scmp.ge.s32.totalorder %s13_s14, 4   ;;  %s8260_s13 = smov %s8262_s15 }
 0x24d   :  { %12 = sbr.rel (!%p10_p5) target bundleno = 2 (0x2), region = 73 }

</bundles_post_ra>
